<compile_context>
chip_gen: v7x
topology: tpu7x:2x2x1
jax: 0.10.0
libtpu: 0.0.40
codegen_flags: <defaults>
</compile_context>

<pallas_src>
import functools

import jax
import jax.numpy as jnp
from jax.experimental import pallas as pl
from jax.experimental.pallas import tpu as pltpu


def _leaky(x, slope=0.01):
    # F.leaky_relu with the default negative_slope
    return jnp.where(x >= 0, x, slope * x)


# ---------------------------------------------------------------------------
# Kernel 1: the whole SelfAttention stack for one batch row.
#   grid = (B, n_layer); the output block (one batch row of activations) is
#   resident across the layer axis and doubles as the running state.
# ---------------------------------------------------------------------------
def attention_stack_kernel(x0_ref, wqkv_ref, bqkv_ref, wout_ref, bout_ref,
                           lnw_ref, lnb_ref, acts_ref,
                           *, n_head, dh, dv, att_dim):
    layer = pl.program_id(1)

    @pl.when(layer == 0)
    def _init():
        acts_ref[...] = x0_ref[...]

    x = acts_ref[...]                                   # (T, D) f32 running state
    inv_scale = 1.0 / (float(dh) ** 0.5)                # scale = sqrt(n_input // n_head)

    # ---- fused QKV projection: one lane-dense bf16 MXU matmul (K=D, N=240) ----
    qkv = jnp.dot(x.astype(jnp.bfloat16), wqkv_ref[...],
                  preferred_element_type=jnp.float32) + bqkv_ref[...]
    qkv = _leaky(qkv)                                   # (T, P) f32

    # ---- split heads with static lane slices, group heads on a leading axis ----
    q_heads, k_heads, v_heads = [], [], []
    for h in range(n_head):
        q_heads.append(qkv[:, h * dh:(h + 1) * dh][None])
        k_heads.append(qkv[:, att_dim + h * dh: att_dim + (h + 1) * dh][None])
        v_heads.append(qkv[:, 2 * att_dim + h * dv: 2 * att_dim + (h + 1) * dv][None])
    qg = jnp.concatenate(q_heads, axis=0) * inv_scale   # (H, T, dh), scale folded in
    kg = jnp.concatenate(k_heads, axis=0)                # (H, T, dh)
    vg = jnp.concatenate(v_heads, axis=0)                # (H, T, dv)

    # ---- per-head attention (bf16 MXU operands, f32 accumulation) ----
    sim = jnp.einsum('htd,hsd->hts', qg.astype(jnp.bfloat16), kg.astype(jnp.bfloat16),
                     preferred_element_type=jnp.float32)          # (H, T, T)
    sim = sim - jnp.max(sim, axis=-1, keepdims=True)
    p = jnp.exp(sim)
    p = p / jnp.sum(p, axis=-1, keepdims=True)                    # exact softmax
    og = jnp.einsum('hts,hsd->htd', p.astype(jnp.bfloat16), vg.astype(jnp.bfloat16),
                    preferred_element_type=jnp.float32)           # (H, T, dv)

    # ---- head-major concat (matches torch layout) + ONE output projection ----
    o2 = jnp.concatenate([og[h] for h in range(n_head)], axis=-1)  # (T, H*dv)
    proj = jnp.dot(o2.astype(jnp.bfloat16), wout_ref[...],
                   preferred_element_type=jnp.float32) + bout_ref[...]
    y = x + _leaky(proj)                                           # residual

    # ---- LayerNorm (biased variance, eps=1e-5, affine) ----
    mu = jnp.mean(y, axis=-1, keepdims=True)
    var = jnp.mean((y - mu) ** 2, axis=-1, keepdims=True)
    acts_ref[...] = (y - mu) * jax.lax.rsqrt(var + 1e-5) * lnw_ref[...] + lnb_ref[...]


# ---------------------------------------------------------------------------
# Kernel 2: final projection + time-step gather + masked-LM cross-entropy.
#   index / target arrive via scalar prefetch (SMEM); gather and pick are
#   SMEM-driven (no HBM one-hot arrays, no one-hot matmuls).
# ---------------------------------------------------------------------------
def mlm_loss_kernel(idx_ref, tgt_ref,                 # scalar-prefetch (SMEM)
                    acts_ref, wproj_ref, bproj_ref, emb_ref,
                    loss_ref, enc_scr):
    B, T, D = acts_ref.shape
    M = idx_ref.shape[1]
    Nm = B * M
    V, Dw = emb_ref.shape

    x = acts_ref[...].reshape(B * T, D)
    enc = _leaky(jnp.dot(x.astype(jnp.bfloat16), wproj_ref[...],
                         preferred_element_type=jnp.float32) + bproj_ref[...])  # (N, Dw)
    enc_scr[...] = enc

    # torch .gather(1, index...) as SMEM-indexed dynamic row slices
    rows = []
    for b in range(B):
        for m in range(M):
            g = b * T + idx_ref[b, m]
            rows.append(enc_scr[pl.ds(g, 1), :])       # (1, Dw)
    hidden = jnp.concatenate(rows, axis=0)              # (Nm, Dw)

    # tied-weight vocab projection (contract against emb directly, no .T copy)
    logits = jnp.einsum('nd,vd->nv', hidden.astype(jnp.bfloat16), emb_ref[...],
                        preferred_element_type=jnp.float32)       # (Nm, V)

    # F.log_softmax(logits, 1)
    m1 = jnp.max(logits, axis=-1, keepdims=True)
    lse1 = jnp.log(jnp.sum(jnp.exp(logits - m1), axis=-1, keepdims=True)) + m1
    z = logits - lse1
    # F.cross_entropy(z, target), mean reduction — keeps the reference's
    # (mathematically redundant) second log_softmax for semantic parity.
    m2 = jnp.max(z, axis=-1, keepdims=True)
    lse2 = jnp.log(jnp.sum(jnp.exp(z - m2), axis=-1, keepdims=True)) + m2

    # per-row target pick via one-hot compare built from SMEM targets
    iota_v = jax.lax.broadcasted_iota(jnp.int32, (1, V), 1)
    oh_rows = [(iota_v == tgt_ref[r]).astype(jnp.float32) for r in range(Nm)]
    onehot = jnp.concatenate(oh_rows, axis=0)            # (Nm, V)
    picked = jnp.sum(z * onehot, axis=-1, keepdims=True)  # (Nm, 1)

    loss_ref[...] = jnp.sum(lse2 - picked, axis=0, keepdims=True) * (1.0 / Nm)


# ---------------------------------------------------------------------------
# Full Transformer forward (masked-LM loss)
# ---------------------------------------------------------------------------
def transformer_forward(params, seq, index, target, *, n_head=6):
    B, T = seq.shape
    emb_w = params['emb_weight'].astype(jnp.float32)     # (V, Dw), tied with trans
    pos_w = params['pos_weight']                         # (512, Dp)
    D = params['layers'][0]['w_cp'].shape[0]
    V, Dw = emb_w.shape
    dh = D // n_head
    att_dim = dh * n_head
    dv = D // 2
    P = 2 * att_dim + dv * n_head
    n_layer = len(params['layers'])

    # embedding lookups + position ids (XLA glue)
    word_emb = emb_w[seq]                                 # (B, T, Dw)
    pos = jnp.arange(T) % pos_w.shape[0]
    pos_emb = jnp.broadcast_to(pos_w[pos][None, :, :], (B, T, pos_w.shape[1]))
    x0 = jnp.concatenate([word_emb, pos_emb], axis=-1).astype(jnp.float32)  # (B, T, D)

    # layer-stacked weights; MXU operands packed bf16 (f32 accumulation in-kernel)
    w_qkv = jnp.stack([lp['w_cp'] for lp in params['layers']]).astype(jnp.bfloat16)
    b_qkv = jnp.stack([lp['b_cp'] for lp in params['layers']]).astype(jnp.float32)
    w_out = jnp.stack([lp['w_out'] for lp in params['layers']]).astype(jnp.bfloat16)
    b_out = jnp.stack([lp['b_out'] for lp in params['layers']]).astype(jnp.float32)
    ln_w = jnp.stack([lp['ln_w'] for lp in params['layers']]).astype(jnp.float32)
    ln_b = jnp.stack([lp['ln_b'] for lp in params['layers']]).astype(jnp.float32)

    # ---------------- call 1: attention stack ----------------
    def layer_spec(shape):
        nd = len(shape)
        return pl.BlockSpec((pl.Squeezed(),) + tuple(shape[1:]),
                            lambda b, l, _nd=nd: (l,) + (0,) * (_nd - 1))

    batch_spec = pl.BlockSpec((pl.Squeezed(), T, D), lambda b, l: (b, 0, 0))

    flops1 = n_layer * B * (2 * T * D * P
                            + 2 * n_head * T * T * dh + 2 * n_head * T * T * dv
                            + 2 * T * (n_head * dv) * D)
    cost1 = pl.CostEstimate(
        flops=int(flops1),
        transcendentals=int(n_layer * B * (n_head * T * T + T)),
        bytes_accessed=int(2 * 4 * B * T * D + n_layer * B * 2 * (D * P + n_head * dv * D)))

    kernel1 = functools.partial(attention_stack_kernel,
                                n_head=n_head, dh=dh, dv=dv, att_dim=att_dim)

    acts = pl.pallas_call(
        kernel1,
        out_shape=jax.ShapeDtypeStruct((B, T, D), jnp.float32),
        grid_spec=pltpu.PrefetchScalarGridSpec(
            num_scalar_prefetch=0,
            grid=(B, n_layer),
            in_specs=[batch_spec,
                      layer_spec(w_qkv.shape), layer_spec(b_qkv.shape),
                      layer_spec(w_out.shape), layer_spec(b_out.shape),
                      layer_spec(ln_w.shape), layer_spec(ln_b.shape)],
            out_specs=batch_spec),
        compiler_params=pltpu.CompilerParams(
            dimension_semantics=("parallel", "arbitrary"),
            vmem_limit_bytes=48 * 1024 * 1024),
        cost_estimate=cost1,
    )(x0, w_qkv, b_qkv, w_out, b_out, ln_w, ln_b)

    # ---------------- call 2: projection + gather + loss ----------------
    w_proj = params['w_proj'].astype(jnp.bfloat16)
    b_proj = params['b_proj'].astype(jnp.float32)
    emb_bf = emb_w.astype(jnp.bfloat16)
    Nm = index.shape[0] * index.shape[1]

    def const_spec(shape):
        nd = len(shape)
        return pl.BlockSpec(tuple(shape), lambda i, *_, _nd=nd: (0,) * _nd)

    cost2 = pl.CostEstimate(
        flops=int(2 * B * T * D * Dw + 2 * Nm * Dw * V),
        transcendentals=int(2 * Nm * V),
        bytes_accessed=int(4 * B * T * D + 2 * (D * Dw + V * Dw) + 4 * Nm * (V + 1)))

    loss = pl.pallas_call(
        mlm_loss_kernel,
        out_shape=jax.ShapeDtypeStruct((1, 1), jnp.float32),
        grid_spec=pltpu.PrefetchScalarGridSpec(
            num_scalar_prefetch=2,                       # index, target -> SMEM
            grid=(1,),
            in_specs=[const_spec(acts.shape), const_spec(w_proj.shape),
                      const_spec(b_proj.shape), const_spec(emb_bf.shape)],
            out_specs=pl.BlockSpec((1, 1), lambda i, *_: (0, 0)),
            scratch_shapes=[pltpu.VMEM((B * T, Dw), jnp.float32)]),
        compiler_params=pltpu.CompilerParams(
            dimension_semantics=("arbitrary",),
            vmem_limit_bytes=48 * 1024 * 1024),
        cost_estimate=cost2,
    )(index.astype(jnp.int32), target.reshape(-1).astype(jnp.int32),
      acts, w_proj, b_proj, emb_bf)

    return loss[0, 0]


# ---------------------------------------------------------------------------
# Deterministic parameter construction (synthetic; shapes follow module __init__,
# stored directly in the x-multiplying layout W s.t. y = x @ W + b)
# ---------------------------------------------------------------------------
def init_params(key, vocab_size, n_embedding, n_layer, n_head):
    V = vocab_size + 4
    Dw = n_embedding - n_embedding // 4
    Dp = n_embedding // 4
    D = n_embedding
    att_dim = (D // n_head) * n_head
    v_dim = (D // 2) * n_head
    P = 2 * att_dim + v_dim

    keys = jax.random.split(key, 4 + 4 * n_layer)
    params = {
        'emb_weight': 0.1 * jax.random.normal(keys[0], (V, Dw), jnp.float32),
        'pos_weight': 0.1 * jax.random.normal(keys[1], (512, Dp), jnp.float32),
        'w_proj': 0.05 * jax.random.normal(keys[2], (D, Dw), jnp.float32),
        'b_proj': 0.05 * jax.random.normal(keys[3], (1, Dw), jnp.float32),
        'layers': [],
    }
    for l in range(n_layer):
        ks = keys[4 + 4 * l: 8 + 4 * l]
        params['layers'].append(dict(
            w_cp=0.05 * jax.random.normal(ks[0], (D, P), jnp.float32),
            b_cp=0.05 * jax.random.normal(ks[1], (1, P), jnp.float32),
            w_out=0.05 * jax.random.normal(ks[2], (v_dim, D), jnp.float32),
            b_out=0.05 * jax.random.normal(ks[3], (1, D), jnp.float32),
            ln_w=jnp.ones((1, D), jnp.float32),
            ln_b=jnp.zeros((1, D), jnp.float32),
        ))
    return params


if __name__ == "__main__":
    vocab_size = 20
    n_embedding = 48     # D=48, Dw=36, Dp=12, n_head=6 -> dh=8, dv=24, att_dim=48, P=240
    n_layer = 2
    n_head = 6
    B, T, M = 2, 8, 4

    key = jax.random.PRNGKey(0)
    kp, k1, k2, k3 = jax.random.split(key, 4)
    params = init_params(kp, vocab_size, n_embedding, n_layer, n_head)

    seq = jax.random.randint(k1, (B, T), 0, vocab_size + 4, dtype=jnp.int32)
    index = jax.random.randint(k2, (B, M), 0, T, dtype=jnp.int32)
    target = jax.random.randint(k3, (B, M), 0, vocab_size + 4, dtype=jnp.int32)

    fwd = jax.jit(functools.partial(transformer_forward, n_head=n_head))
    loss = jax.block_until_ready(fwd(params, seq, index, target))
    assert bool(jnp.isfinite(loss)), "loss is not finite"
    print("KERNEL_OK")
</pallas_src>

<mosaic_0001>
module attributes {stable_mosaic.version = 11 : i64} {
  func.func @attention_stack_kernel(%arg0: i32, %arg1: i32, %arg2: memref<1x8x48xf32, #tpu.memory_space<vmem>>, %arg3: memref<1x48x240xbf16, #tpu.memory_space<vmem>>, %arg4: memref<1x1x240xf32, #tpu.memory_space<vmem>>, %arg5: memref<1x144x48xbf16, #tpu.memory_space<vmem>>, %arg6: memref<1x1x48xf32, #tpu.memory_space<vmem>>, %arg7: memref<1x1x48xf32, #tpu.memory_space<vmem>>, %arg8: memref<1x1x48xf32, #tpu.memory_space<vmem>>, %arg9: memref<1x8x48xf32, #tpu.memory_space<vmem>>) attributes {dimension_semantics = [#tpu.dimension_semantics<parallel>, #tpu.dimension_semantics<arbitrary>], iteration_bounds = array<i64: 2, 2>, scalar_prefetch = 0 : i64, scratch_operands = 0 : i64, tpu.core_type = #tpu.core_type<tc>, window_params = [{transform_indices = @transform_0, window_bounds = array<i64: 1, 8, 48>}, {transform_indices = @transform_1, window_bounds = array<i64: 1, 48, 240>}, {transform_indices = @transform_2, window_bounds = array<i64: 1, 1, 240>}, {transform_indices = @transform_3, window_bounds = array<i64: 1, 144, 48>}, {transform_indices = @transform_4, window_bounds = array<i64: 1, 1, 48>}, {transform_indices = @transform_5, window_bounds = array<i64: 1, 1, 48>}, {transform_indices = @transform_6, window_bounds = array<i64: 1, 1, 48>}, {transform_indices = @transform_7, window_bounds = array<i64: 1, 8, 48>}]} {
    %c0_i32 = arith.constant 0 : i32
    %0 = arith.cmpi eq, %arg1, %c0_i32 : i32
    %1 = arith.extui %0 : i1 to i32
    %c0_i32_0 = arith.constant 0 : i32
    %2 = arith.cmpi ne, %1, %c0_i32_0 : i32
    scf.if %2 {
      %c0_39 = arith.constant 0 : index
      %c0_40 = arith.constant 0 : index
      %c0_41 = arith.constant 0 : index
      %130 = vector.load %arg2[%c0_39, %c0_40, %c0_41] : memref<1x8x48xf32, #tpu.memory_space<vmem>>, vector<1x8x48xf32>
      %131 = vector.shape_cast %130 : vector<1x8x48xf32> to vector<8x48xf32>
      %c0_42 = arith.constant 0 : index
      %c0_43 = arith.constant 0 : index
      %c0_44 = arith.constant 0 : index
      %132 = vector.load %arg9[%c0_42, %c0_43, %c0_44] : memref<1x8x48xf32, #tpu.memory_space<vmem>>, vector<1x8x48xf32>
      %133 = vector.shape_cast %132 : vector<1x8x48xf32> to vector<8x48xf32>
      %134 = vector.shape_cast %131 : vector<8x48xf32> to vector<1x8x48xf32>
      tpu.vector_store %arg9[%c0_42, %c0_43, %c0_44], %134 {strides = array<i32>} : memref<1x8x48xf32, #tpu.memory_space<vmem>>, vector<1x8x48xf32>,
    } else {
    }
    %c0 = arith.constant 0 : index
    %c0_1 = arith.constant 0 : index
    %c0_2 = arith.constant 0 : index
    %3 = vector.load %arg9[%c0, %c0_1, %c0_2] : memref<1x8x48xf32, #tpu.memory_space<vmem>>, vector<1x8x48xf32>
    %4 = vector.shape_cast %3 : vector<1x8x48xf32> to vector<8x48xf32>
    %5 = arith.truncf %4 : vector<8x48xf32> to vector<8x48xbf16>
    %c0_3 = arith.constant 0 : index
    %c0_4 = arith.constant 0 : index
    %c0_5 = arith.constant 0 : index
    %6 = vector.load %arg3[%c0_3, %c0_4, %c0_5] : memref<1x48x240xbf16, #tpu.memory_space<vmem>>, vector<1x48x240xbf16>
    %7 = vector.shape_cast %6 : vector<1x48x240xbf16> to vector<48x240xbf16>
    %cst = arith.constant dense<0.000000e+00> : vector<8x240xf32>
    %8 = tpu.matmul %5, %7, %cst {dimension_numbers = #tpu.dot_dimension_numbers<[1], [0], [0], [1], [0, 0, 1, 1], [], []>} : vector<8x48xbf16>, vector<48x240xbf16>, vector<8x240xf32> -> vector<8x240xf32>
    %c0_6 = arith.constant 0 : index
    %c0_7 = arith.constant 0 : index
    %c0_8 = arith.constant 0 : index
    %9 = vector.load %arg4[%c0_6, %c0_7, %c0_8] : memref<1x1x240xf32, #tpu.memory_space<vmem>>, vector<1x1x240xf32>
    %10 = vector.shape_cast %9 : vector<1x1x240xf32> to vector<1x240xf32>
    %11 = vector.broadcast %10 : vector<1x240xf32> to vector<8x240xf32>
    %12 = arith.addf %8, %11 : vector<8x240xf32>
    %cst_9 = arith.constant 0.000000e+00 : f32
    %13 = vector.broadcast %cst_9 : f32 to vector<8x240xf32>
    %14 = arith.cmpf oge, %12, %13 : vector<8x240xf32>
    %cst_10 = arith.constant 0.00999999977 : f32
    %15 = vector.broadcast %cst_10 : f32 to vector<8x240xf32>
    %16 = arith.mulf %15, %12 : vector<8x240xf32>
    %17 = arith.select %14, %12, %16 : vector<8x240xi1>, vector<8x240xf32>
    %18 = vector.extract_strided_slice %17 {offsets = [0, 0], sizes = [8, 8], strides = [1, 1]} : vector<8x240xf32> to vector<8x8xf32>
    %19 = vector.shape_cast %18 : vector<8x8xf32> to vector<1x8x8xf32>
    %20 = vector.extract_strided_slice %17 {offsets = [0, 48], sizes = [8, 8], strides = [1, 1]} : vector<8x240xf32> to vector<8x8xf32>
    %21 = vector.shape_cast %20 : vector<8x8xf32> to vector<1x8x8xf32>
    %22 = vector.extract_strided_slice %17 {offsets = [0, 96], sizes = [8, 24], strides = [1, 1]} : vector<8x240xf32> to vector<8x24xf32>
    %23 = vector.shape_cast %22 : vector<8x24xf32> to vector<1x8x24xf32>
    %24 = vector.extract_strided_slice %17 {offsets = [0, 8], sizes = [8, 8], strides = [1, 1]} : vector<8x240xf32> to vector<8x8xf32>
    %25 = vector.shape_cast %24 : vector<8x8xf32> to vector<1x8x8xf32>
    %26 = vector.extract_strided_slice %17 {offsets = [0, 56], sizes = [8, 8], strides = [1, 1]} : vector<8x240xf32> to vector<8x8xf32>
    %27 = vector.shape_cast %26 : vector<8x8xf32> to vector<1x8x8xf32>
    %28 = vector.extract_strided_slice %17 {offsets = [0, 120], sizes = [8, 24], strides = [1, 1]} : vector<8x240xf32> to vector<8x24xf32>
    %29 = vector.shape_cast %28 : vector<8x24xf32> to vector<1x8x24xf32>
    %30 = vector.extract_strided_slice %17 {offsets = [0, 16], sizes = [8, 8], strides = [1, 1]} : vector<8x240xf32> to vector<8x8xf32>
    %31 = vector.shape_cast %30 : vector<8x8xf32> to vector<1x8x8xf32>
    %32 = vector.extract_strided_slice %17 {offsets = [0, 64], sizes = [8, 8], strides = [1, 1]} : vector<8x240xf32> to vector<8x8xf32>
    %33 = vector.shape_cast %32 : vector<8x8xf32> to vector<1x8x8xf32>
    %34 = vector.extract_strided_slice %17 {offsets = [0, 144], sizes = [8, 24], strides = [1, 1]} : vector<8x240xf32> to vector<8x24xf32>
    %35 = vector.shape_cast %34 : vector<8x24xf32> to vector<1x8x24xf32>
    %36 = vector.extract_strided_slice %17 {offsets = [0, 24], sizes = [8, 8], strides = [1, 1]} : vector<8x240xf32> to vector<8x8xf32>
    %37 = vector.shape_cast %36 : vector<8x8xf32> to vector<1x8x8xf32>
    %38 = vector.extract_strided_slice %17 {offsets = [0, 72], sizes = [8, 8], strides = [1, 1]} : vector<8x240xf32> to vector<8x8xf32>
    %39 = vector.shape_cast %38 : vector<8x8xf32> to vector<1x8x8xf32>
    %40 = vector.extract_strided_slice %17 {offsets = [0, 168], sizes = [8, 24], strides = [1, 1]} : vector<8x240xf32> to vector<8x24xf32>
    %41 = vector.shape_cast %40 : vector<8x24xf32> to vector<1x8x24xf32>
    %42 = vector.extract_strided_slice %17 {offsets = [0, 32], sizes = [8, 8], strides = [1, 1]} : vector<8x240xf32> to vector<8x8xf32>
    %43 = vector.shape_cast %42 : vector<8x8xf32> to vector<1x8x8xf32>
    %44 = vector.extract_strided_slice %17 {offsets = [0, 80], sizes = [8, 8], strides = [1, 1]} : vector<8x240xf32> to vector<8x8xf32>
    %45 = vector.shape_cast %44 : vector<8x8xf32> to vector<1x8x8xf32>
    %46 = vector.extract_strided_slice %17 {offsets = [0, 192], sizes = [8, 24], strides = [1, 1]} : vector<8x240xf32> to vector<8x24xf32>
    %47 = vector.shape_cast %46 : vector<8x24xf32> to vector<1x8x24xf32>
    %48 = vector.extract_strided_slice %17 {offsets = [0, 40], sizes = [8, 8], strides = [1, 1]} : vector<8x240xf32> to vector<8x8xf32>
    %49 = vector.shape_cast %48 : vector<8x8xf32> to vector<1x8x8xf32>
    %50 = vector.extract_strided_slice %17 {offsets = [0, 88], sizes = [8, 8], strides = [1, 1]} : vector<8x240xf32> to vector<8x8xf32>
    %51 = vector.shape_cast %50 : vector<8x8xf32> to vector<1x8x8xf32>
    %52 = vector.extract_strided_slice %17 {offsets = [0, 216], sizes = [8, 24], strides = [1, 1]} : vector<8x240xf32> to vector<8x24xf32>
    %53 = vector.shape_cast %52 : vector<8x24xf32> to vector<1x8x24xf32>
    %54 = tpu.concatenate %19, %25, %31, %37, %43, %49 in 0 : vector<1x8x8xf32>, vector<1x8x8xf32>, vector<1x8x8xf32>, vector<1x8x8xf32>, vector<1x8x8xf32>, vector<1x8x8xf32> -> vector<6x8x8xf32>
    %cst_11 = arith.constant 0.353553385 : f32
    %55 = vector.broadcast %cst_11 : f32 to vector<6x8x8xf32>
    %56 = arith.mulf %54, %55 : vector<6x8x8xf32>
    %57 = tpu.concatenate %21, %27, %33, %39, %45, %51 in 0 : vector<1x8x8xf32>, vector<1x8x8xf32>, vector<1x8x8xf32>, vector<1x8x8xf32>, vector<1x8x8xf32>, vector<1x8x8xf32> -> vector<6x8x8xf32>
    %58 = tpu.concatenate %23, %29, %35, %41, %47, %53 in 0 : vector<1x8x24xf32>, vector<1x8x24xf32>, vector<1x8x24xf32>, vector<1x8x24xf32>, vector<1x8x24xf32>, vector<1x8x24xf32> -> vector<6x8x24xf32>
    %59 = arith.truncf %56 : vector<6x8x8xf32> to vector<6x8x8xbf16>
    %60 = arith.truncf %57 : vector<6x8x8xf32> to vector<6x8x8xbf16>
    "tpu.trace_start"() <{level = 10 : i32, message = "htd,hsd->hts"}> : () -> ()
    %cst_12 = arith.constant dense<0.000000e+00> : vector<6x8x8xf32>
    %61 = tpu.matmul %59, %60, %cst_12 {dimension_numbers = #tpu.dot_dimension_numbers<[2], [2], [1], [1], [0, 0, 0, 1, 1, 1], [0], [0]>} : vector<6x8x8xbf16>, vector<6x8x8xbf16>, vector<6x8x8xf32> -> vector<6x8x8xf32>
    "tpu.trace_stop"() : () -> ()
    %cst_13 = arith.constant dense<0xFF800000> : vector<6x8xf32>
    %62 = vector.multi_reduction <maximumf>, %61, %cst_13 [2] : vector<6x8x8xf32> to vector<6x8xf32>
    %63 = vector.shape_cast %62 : vector<6x8xf32> to vector<6x8x1xf32>
    %64 = vector.broadcast %63 : vector<6x8x1xf32> to vector<6x8x8xf32>
    %65 = arith.subf %61, %64 : vector<6x8x8xf32>
    %66 = math.exp %65 : vector<6x8x8xf32>
    %cst_14 = arith.constant dense<0.000000e+00> : vector<6x8xf32>
    %67 = vector.multi_reduction <add>, %66, %cst_14 [2] : vector<6x8x8xf32> to vector<6x8xf32>
    %68 = vector.shape_cast %67 : vector<6x8xf32> to vector<6x8x1xf32>
    %69 = vector.broadcast %68 : vector<6x8x1xf32> to vector<6x8x8xf32>
    %70 = arith.divf %66, %69 : vector<6x8x8xf32>
    %71 = arith.truncf %70 : vector<6x8x8xf32> to vector<6x8x8xbf16>
    %72 = arith.truncf %58 : vector<6x8x24xf32> to vector<6x8x24xbf16>
    "tpu.trace_start"() <{level = 10 : i32, message = "hts,hsd->htd"}> : () -> ()
    %cst_15 = arith.constant dense<0.000000e+00> : vector<6x8x24xf32>
    %73 = tpu.matmul %71, %72, %cst_15 {dimension_numbers = #tpu.dot_dimension_numbers<[2], [1], [1], [2], [0, 0, 0, 1, 1, 2], [0], [0]>} : vector<6x8x8xbf16>, vector<6x8x24xbf16>, vector<6x8x24xf32> -> vector<6x8x24xf32>
    "tpu.trace_stop"() : () -> ()
    %74 = vector.extract_strided_slice %73 {offsets = [0, 0, 0], sizes = [1, 8, 24], strides = [1, 1, 1]} : vector<6x8x24xf32> to vector<1x8x24xf32>
    %75 = vector.shape_cast %74 : vector<1x8x24xf32> to vector<8x24xf32>
    %76 = vector.extract_strided_slice %73 {offsets = [1, 0, 0], sizes = [1, 8, 24], strides = [1, 1, 1]} : vector<6x8x24xf32> to vector<1x8x24xf32>
    %77 = vector.shape_cast %76 : vector<1x8x24xf32> to vector<8x24xf32>
    %78 = vector.extract_strided_slice %73 {offsets = [2, 0, 0], sizes = [1, 8, 24], strides = [1, 1, 1]} : vector<6x8x24xf32> to vector<1x8x24xf32>
    %79 = vector.shape_cast %78 : vector<1x8x24xf32> to vector<8x24xf32>
    %80 = vector.extract_strided_slice %73 {offsets = [3, 0, 0], sizes = [1, 8, 24], strides = [1, 1, 1]} : vector<6x8x24xf32> to vector<1x8x24xf32>
    %81 = vector.shape_cast %80 : vector<1x8x24xf32> to vector<8x24xf32>
    %82 = vector.extract_strided_slice %73 {offsets = [4, 0, 0], sizes = [1, 8, 24], strides = [1, 1, 1]} : vector<6x8x24xf32> to vector<1x8x24xf32>
    %83 = vector.shape_cast %82 : vector<1x8x24xf32> to vector<8x24xf32>
    %84 = vector.extract_strided_slice %73 {offsets = [5, 0, 0], sizes = [1, 8, 24], strides = [1, 1, 1]} : vector<6x8x24xf32> to vector<1x8x24xf32>
    %85 = vector.shape_cast %84 : vector<1x8x24xf32> to vector<8x24xf32>
    %86 = tpu.concatenate %75, %77, %79, %81, %83, %85 in 1 : vector<8x24xf32>, vector<8x24xf32>, vector<8x24xf32>, vector<8x24xf32>, vector<8x24xf32>, vector<8x24xf32> -> vector<8x144xf32>
    %87 = arith.truncf %86 : vector<8x144xf32> to vector<8x144xbf16>
    %c0_16 = arith.constant 0 : index
    %c0_17 = arith.constant 0 : index
    %c0_18 = arith.constant 0 : index
    %88 = vector.load %arg5[%c0_16, %c0_17, %c0_18] : memref<1x144x48xbf16, #tpu.memory_space<vmem>>, vector<1x144x48xbf16>
    %89 = vector.shape_cast %88 : vector<1x144x48xbf16> to vector<144x48xbf16>
    %cst_19 = arith.constant dense<0.000000e+00> : vector<8x48xf32>
    %90 = tpu.matmul %87, %89, %cst_19 {dimension_numbers = #tpu.dot_dimension_numbers<[1], [0], [0], [1], [0, 0, 1, 1], [], []>} : vector<8x144xbf16>, vector<144x48xbf16>, vector<8x48xf32> -> vector<8x48xf32>
    %c0_20 = arith.constant 0 : index
    %c0_21 = arith.constant 0 : index
    %c0_22 = arith.constant 0 : index
    %91 = vector.load %arg6[%c0_20, %c0_21, %c0_22] : memref<1x1x48xf32, #tpu.memory_space<vmem>>, vector<1x1x48xf32>
    %92 = vector.shape_cast %91 : vector<1x1x48xf32> to vector<1x48xf32>
    %93 = vector.broadcast %92 : vector<1x48xf32> to vector<8x48xf32>
    %94 = arith.addf %90, %93 : vector<8x48xf32>
    %cst_23 = arith.constant 0.000000e+00 : f32
    %95 = vector.broadcast %cst_23 : f32 to vector<8x48xf32>
    %96 = arith.cmpf oge, %94, %95 : vector<8x48xf32>
    %cst_24 = arith.constant 0.00999999977 : f32
    %97 = vector.broadcast %cst_24 : f32 to vector<8x48xf32>
    %98 = arith.mulf %97, %94 : vector<8x48xf32>
    %99 = arith.select %96, %94, %98 : vector<8x48xi1>, vector<8x48xf32>
    %100 = arith.addf %4, %99 : vector<8x48xf32>
    %cst_25 = arith.constant dense<0.000000e+00> : vector<8xf32>
    %101 = vector.multi_reduction <add>, %100, %cst_25 [1] : vector<8x48xf32> to vector<8xf32>
    %102 = vector.shape_cast %101 : vector<8xf32> to vector<8x1xf32>
    %cst_26 = arith.constant 4.800000e+01 : f32
    %103 = vector.broadcast %cst_26 : f32 to vector<8x1xf32>
    %104 = arith.divf %102, %103 : vector<8x1xf32>
    %105 = vector.broadcast %104 : vector<8x1xf32> to vector<8x48xf32>
    %106 = arith.subf %100, %105 : vector<8x48xf32>
    %107 = arith.mulf %106, %106 : vector<8x48xf32>
    %cst_27 = arith.constant dense<0.000000e+00> : vector<8xf32>
    %108 = vector.multi_reduction <add>, %107, %cst_27 [1] : vector<8x48xf32> to vector<8xf32>
    %109 = vector.shape_cast %108 : vector<8xf32> to vector<8x1xf32>
    %cst_28 = arith.constant 4.800000e+01 : f32
    %110 = vector.broadcast %cst_28 : f32 to vector<8x1xf32>
    %111 = arith.divf %109, %110 : vector<8x1xf32>
    %112 = vector.broadcast %104 : vector<8x1xf32> to vector<8x48xf32>
    %113 = arith.subf %100, %112 : vector<8x48xf32>
    %cst_29 = arith.constant 9.99999974E-6 : f32
    %114 = vector.broadcast %cst_29 : f32 to vector<8x1xf32>
    %115 = arith.addf %111, %114 : vector<8x1xf32>
    %116 = math.rsqrt %115 : vector<8x1xf32>
    %117 = vector.broadcast %116 : vector<8x1xf32> to vector<8x48xf32>
    %118 = arith.mulf %113, %117 : vector<8x48xf32>
    %c0_30 = arith.constant 0 : index
    %c0_31 = arith.constant 0 : index
    %c0_32 = arith.constant 0 : index
    %119 = vector.load %arg7[%c0_30, %c0_31, %c0_32] : memref<1x1x48xf32, #tpu.memory_space<vmem>>, vector<1x1x48xf32>
    %120 = vector.shape_cast %119 : vector<1x1x48xf32> to vector<1x48xf32>
    %121 = vector.broadcast %120 : vector<1x48xf32> to vector<8x48xf32>
    %122 = arith.mulf %118, %121 : vector<8x48xf32>
    %c0_33 = arith.constant 0 : index
    %c0_34 = arith.constant 0 : index
    %c0_35 = arith.constant 0 : index
    %123 = vector.load %arg8[%c0_33, %c0_34, %c0_35] : memref<1x1x48xf32, #tpu.memory_space<vmem>>, vector<1x1x48xf32>
    %124 = vector.shape_cast %123 : vector<1x1x48xf32> to vector<1x48xf32>
    %125 = vector.broadcast %124 : vector<1x48xf32> to vector<8x48xf32>
    %126 = arith.addf %122, %125 : vector<8x48xf32>
    %c0_36 = arith.constant 0 : index
    %c0_37 = arith.constant 0 : index
    %c0_38 = arith.constant 0 : index
    %127 = vector.load %arg9[%c0_36, %c0_37, %c0_38] : memref<1x8x48xf32, #tpu.memory_space<vmem>>, vector<1x8x48xf32>
    %128 = vector.shape_cast %127 : vector<1x8x48xf32> to vector<8x48xf32>
    %129 = vector.shape_cast %126 : vector<8x48xf32> to vector<1x8x48xf32>
    tpu.vector_store %arg9[%c0_36, %c0_37, %c0_38], %129 {strides = array<i32>} : memref<1x8x48xf32, #tpu.memory_space<vmem>>, vector<1x8x48xf32>,
    return
  }
  func.func @transform_0(%arg0: i32, %arg1: i32) -> (i32, i32, i32) {
    %c0_i32 = arith.constant 0 : i32
    %c0_i32_0 = arith.constant 0 : i32
    %c0_i32_1 = arith.constant 0 : i32
    return %arg0, %c0_i32, %c0_i32_0 : i32, i32, i32
  }
  func.func @transform_1(%arg0: i32, %arg1: i32) -> (i32, i32, i32) {
    %c0_i32 = arith.constant 0 : i32
    %c0_i32_0 = arith.constant 0 : i32
    %c0_i32_1 = arith.constant 0 : i32
    return %arg1, %c0_i32, %c0_i32_0 : i32, i32, i32
  }
  func.func @transform_2(%arg0: i32, %arg1: i32) -> (i32, i32, i32) {
    %c0_i32 = arith.constant 0 : i32
    %c0_i32_0 = arith.constant 0 : i32
    %c0_i32_1 = arith.constant 0 : i32
    return %arg1, %c0_i32, %c0_i32_0 : i32, i32, i32
  }
  func.func @transform_3(%arg0: i32, %arg1: i32) -> (i32, i32, i32) {
    %c0_i32 = arith.constant 0 : i32
    %c0_i32_0 = arith.constant 0 : i32
    %c0_i32_1 = arith.constant 0 : i32
    return %arg1, %c0_i32, %c0_i32_0 : i32, i32, i32
  }
  func.func @transform_4(%arg0: i32, %arg1: i32) -> (i32, i32, i32) {
    %c0_i32 = arith.constant 0 : i32
    %c0_i32_0 = arith.constant 0 : i32
    %c0_i32_1 = arith.constant 0 : i32
    return %arg1, %c0_i32, %c0_i32_0 : i32, i32, i32
  }
  func.func @transform_5(%arg0: i32, %arg1: i32) -> (i32, i32, i32) {
    %c0_i32 = arith.constant 0 : i32
    %c0_i32_0 = arith.constant 0 : i32
    %c0_i32_1 = arith.constant 0 : i32
    return %arg1, %c0_i32, %c0_i32_0 : i32, i32, i32
  }
  func.func @transform_6(%arg0: i32, %arg1: i32) -> (i32, i32, i32) {
    %c0_i32 = arith.constant 0 : i32
    %c0_i32_0 = arith.constant 0 : i32
    %c0_i32_1 = arith.constant 0 : i32
    return %arg1, %c0_i32, %c0_i32_0 : i32, i32, i32
  }
  func.func @transform_7(%arg0: i32, %arg1: i32) -> (i32, i32, i32) {
    %c0_i32 = arith.constant 0 : i32
    %c0_i32_0 = arith.constant 0 : i32
    %c0_i32_1 = arith.constant 0 : i32
    return %arg0, %c0_i32, %c0_i32_0 : i32, i32, i32
  }
}

module attributes {stable_mosaic.version = 11 : i64} {
  func.func @mlm_loss_kernel(%arg0: i32, %arg1: memref<2x4xi32, #tpu.memory_space<smem>>, %arg2: memref<8xi32, #tpu.memory_space<smem>>, %arg3: memref<2x8x48xf32, #tpu.memory_space<vmem>>, %arg4: memref<48x36xbf16, #tpu.memory_space<vmem>>, %arg5: memref<1x36xf32, #tpu.memory_space<vmem>>, %arg6: memref<24x36xbf16, #tpu.memory_space<vmem>>, %arg7: memref<1x1xf32, #tpu.memory_space<vmem>>, %arg8: memref<16x36xf32, #tpu.memory_space<vmem>>) attributes {dimension_semantics = [#tpu.dimension_semantics<arbitrary>], iteration_bounds = array<i64: 1>, scalar_prefetch = 2 : i64, scratch_operands = 1 : i64, tpu.core_type = #tpu.core_type<tc>, window_params = [{pipeline_mode = #tpu.pipeline_mode<synchronous>, transform_indices = @transform_0, window_bounds = array<i64: 2, 8, 48>}, {pipeline_mode = #tpu.pipeline_mode<synchronous>, transform_indices = @transform_1, window_bounds = array<i64: 48, 36>}, {pipeline_mode = #tpu.pipeline_mode<synchronous>, transform_indices = @transform_2, window_bounds = array<i64: 1, 36>}, {pipeline_mode = #tpu.pipeline_mode<synchronous>, transform_indices = @transform_3, window_bounds = array<i64: 24, 36>}, {pipeline_mode = #tpu.pipeline_mode<synchronous>, transform_indices = @transform_4, window_bounds = array<i64: 1, 1>}]} {
    %c0 = arith.constant 0 : index
    %c0_0 = arith.constant 0 : index
    %c0_1 = arith.constant 0 : index
    %0 = vector.load %arg3[%c0, %c0_0, %c0_1] : memref<2x8x48xf32, #tpu.memory_space<vmem>>, vector<2x8x48xf32>
    %1 = vector.shape_cast %0 : vector<2x8x48xf32> to vector<16x48xf32>
    %2 = arith.truncf %1 : vector<16x48xf32> to vector<16x48xbf16>
    %c0_2 = arith.constant 0 : index
    %c0_3 = arith.constant 0 : index
    %3 = vector.load %arg4[%c0_2, %c0_3] : memref<48x36xbf16, #tpu.memory_space<vmem>>, vector<48x36xbf16>
    %cst = arith.constant dense<0.000000e+00> : vector<16x36xf32>
    %4 = tpu.matmul %2, %3, %cst {dimension_numbers = #tpu.dot_dimension_numbers<[1], [0], [0], [1], [0, 0, 1, 1], [], []>} : vector<16x48xbf16>, vector<48x36xbf16>, vector<16x36xf32> -> vector<16x36xf32>
    %c0_4 = arith.constant 0 : index
    %c0_5 = arith.constant 0 : index
    %5 = vector.load %arg5[%c0_4, %c0_5] : memref<1x36xf32, #tpu.memory_space<vmem>>, vector<1x36xf32>
    %6 = vector.broadcast %5 : vector<1x36xf32> to vector<16x36xf32>
    %7 = arith.addf %4, %6 : vector<16x36xf32>
    %cst_6 = arith.constant 0.000000e+00 : f32
    %8 = vector.broadcast %cst_6 : f32 to vector<16x36xf32>
    %9 = arith.cmpf oge, %7, %8 : vector<16x36xf32>
    %cst_7 = arith.constant 0.00999999977 : f32
    %10 = vector.broadcast %cst_7 : f32 to vector<16x36xf32>
    %11 = arith.mulf %10, %7 : vector<16x36xf32>
    %12 = arith.select %9, %7, %11 : vector<16x36xi1>, vector<16x36xf32>
    %c0_8 = arith.constant 0 : index
    %c0_9 = arith.constant 0 : index
    %13 = vector.load %arg8[%c0_8, %c0_9] : memref<16x36xf32, #tpu.memory_space<vmem>>, vector<16x36xf32>
    tpu.vector_store %arg8[%c0_8, %c0_9], %12 {strides = array<i32>} : memref<16x36xf32, #tpu.memory_space<vmem>>, vector<16x36xf32>,
    %c0_10 = arith.constant 0 : index
    %c0_11 = arith.constant 0 : index
    %14 = memref.load %arg1[%c0_10, %c0_11] : memref<2x4xi32, #tpu.memory_space<smem>>
    %c0_i32 = arith.constant 0 : i32
    %15 = arith.addi %c0_i32, %14 : i32
    %16 = arith.index_cast %15 : i32 to index
    %c0_12 = arith.constant 0 : index
    %17 = vector.load %arg8[%16, %c0_12] : memref<16x36xf32, #tpu.memory_space<vmem>>, vector<1x36xf32>
    %c0_13 = arith.constant 0 : index
    %c1 = arith.constant 1 : index
    %18 = memref.load %arg1[%c0_13, %c1] : memref<2x4xi32, #tpu.memory_space<smem>>
    %c0_i32_14 = arith.constant 0 : i32
    %19 = arith.addi %c0_i32_14, %18 : i32
    %20 = arith.index_cast %19 : i32 to index
    %c0_15 = arith.constant 0 : index
    %21 = vector.load %arg8[%20, %c0_15] : memref<16x36xf32, #tpu.memory_space<vmem>>, vector<1x36xf32>
    %c0_16 = arith.constant 0 : index
    %c2 = arith.constant 2 : index
    %22 = memref.load %arg1[%c0_16, %c2] : memref<2x4xi32, #tpu.memory_space<smem>>
    %c0_i32_17 = arith.constant 0 : i32
    %23 = arith.addi %c0_i32_17, %22 : i32
    %24 = arith.index_cast %23 : i32 to index
    %c0_18 = arith.constant 0 : index
    %25 = vector.load %arg8[%24, %c0_18] : memref<16x36xf32, #tpu.memory_space<vmem>>, vector<1x36xf32>
    %c0_19 = arith.constant 0 : index
    %c3 = arith.constant 3 : index
    %26 = memref.load %arg1[%c0_19, %c3] : memref<2x4xi32, #tpu.memory_space<smem>>
    %c0_i32_20 = arith.constant 0 : i32
    %27 = arith.addi %c0_i32_20, %26 : i32
    %28 = arith.index_cast %27 : i32 to index
    %c0_21 = arith.constant 0 : index
    %29 = vector.load %arg8[%28, %c0_21] : memref<16x36xf32, #tpu.memory_space<vmem>>, vector<1x36xf32>
    %c1_22 = arith.constant 1 : index
    %c0_23 = arith.constant 0 : index
    %30 = memref.load %arg1[%c1_22, %c0_23] : memref<2x4xi32, #tpu.memory_space<smem>>
    %c8_i32 = arith.constant 8 : i32
    %31 = arith.addi %c8_i32, %30 : i32
    %32 = arith.index_cast %31 : i32 to index
    %c0_24 = arith.constant 0 : index
    %33 = vector.load %arg8[%32, %c0_24] : memref<16x36xf32, #tpu.memory_space<vmem>>, vector<1x36xf32>
    %c1_25 = arith.constant 1 : index
    %c1_26 = arith.constant 1 : index
    %34 = memref.load %arg1[%c1_25, %c1_26] : memref<2x4xi32, #tpu.memory_space<smem>>
    %c8_i32_27 = arith.constant 8 : i32
    %35 = arith.addi %c8_i32_27, %34 : i32
    %36 = arith.index_cast %35 : i32 to index
    %c0_28 = arith.constant 0 : index
    %37 = vector.load %arg8[%36, %c0_28] : memref<16x36xf32, #tpu.memory_space<vmem>>, vector<1x36xf32>
    %c1_29 = arith.constant 1 : index
    %c2_30 = arith.constant 2 : index
    %38 = memref.load %arg1[%c1_29, %c2_30] : memref<2x4xi32, #tpu.memory_space<smem>>
    %c8_i32_31 = arith.constant 8 : i32
    %39 = arith.addi %c8_i32_31, %38 : i32
    %40 = arith.index_cast %39 : i32 to index
    %c0_32 = arith.constant 0 : index
    %41 = vector.load %arg8[%40, %c0_32] : memref<16x36xf32, #tpu.memory_space<vmem>>, vector<1x36xf32>
    %c1_33 = arith.constant 1 : index
    %c3_34 = arith.constant 3 : index
    %42 = memref.load %arg1[%c1_33, %c3_34] : memref<2x4xi32, #tpu.memory_space<smem>>
    %c8_i32_35 = arith.constant 8 : i32
    %43 = arith.addi %c8_i32_35, %42 : i32
    %44 = arith.index_cast %43 : i32 to index
    %c0_36 = arith.constant 0 : index
    %45 = vector.load %arg8[%44, %c0_36] : memref<16x36xf32, #tpu.memory_space<vmem>>, vector<1x36xf32>
    %46 = tpu.concatenate %17, %21, %25, %29, %33, %37, %41, %45 in 0 : vector<1x36xf32>, vector<1x36xf32>, vector<1x36xf32>, vector<1x36xf32>, vector<1x36xf32>, vector<1x36xf32>, vector<1x36xf32>, vector<1x36xf32> -> vector<8x36xf32>
    %47 = arith.truncf %46 : vector<8x36xf32> to vector<8x36xbf16>
    %c0_37 = arith.constant 0 : index
    %c0_38 = arith.constant 0 : index
    %48 = vector.load %arg6[%c0_37, %c0_38] : memref<24x36xbf16, #tpu.memory_space<vmem>>, vector<24x36xbf16>
    "tpu.trace_start"() <{level = 10 : i32, message = "nd,vd->nv"}> : () -> ()
    %cst_39 = arith.constant dense<0.000000e+00> : vector<8x24xf32>
    %49 = tpu.matmul %47, %48, %cst_39 {dimension_numbers = #tpu.dot_dimension_numbers<[1], [1], [0], [0], [0, 0, 1, 0], [], []>} : vector<8x36xbf16>, vector<24x36xbf16>, vector<8x24xf32> -> vector<8x24xf32>
    "tpu.trace_stop"() : () -> ()
    %cst_40 = arith.constant dense<0xFF800000> : vector<8xf32>
    %50 = vector.multi_reduction <maximumf>, %49, %cst_40 [1] : vector<8x24xf32> to vector<8xf32>
    %51 = vector.shape_cast %50 : vector<8xf32> to vector<8x1xf32>
    %52 = vector.broadcast %51 : vector<8x1xf32> to vector<8x24xf32>
    %53 = arith.subf %49, %52 : vector<8x24xf32>
    %54 = math.exp %53 : vector<8x24xf32>
    %cst_41 = arith.constant dense<0.000000e+00> : vector<8xf32>
    %55 = vector.multi_reduction <add>, %54, %cst_41 [1] : vector<8x24xf32> to vector<8xf32>
    %56 = vector.shape_cast %55 : vector<8xf32> to vector<8x1xf32>
    %57 = math.log %56 : vector<8x1xf32>
    %58 = arith.addf %57, %51 : vector<8x1xf32>
    %59 = vector.broadcast %58 : vector<8x1xf32> to vector<8x24xf32>
    %60 = arith.subf %49, %59 : vector<8x24xf32>
    %cst_42 = arith.constant dense<0xFF800000> : vector<8xf32>
    %61 = vector.multi_reduction <maximumf>, %60, %cst_42 [1] : vector<8x24xf32> to vector<8xf32>
    %62 = vector.shape_cast %61 : vector<8xf32> to vector<8x1xf32>
    %63 = vector.broadcast %62 : vector<8x1xf32> to vector<8x24xf32>
    %64 = arith.subf %60, %63 : vector<8x24xf32>
    %65 = math.exp %64 : vector<8x24xf32>
    %cst_43 = arith.constant dense<0.000000e+00> : vector<8xf32>
    %66 = vector.multi_reduction <add>, %65, %cst_43 [1] : vector<8x24xf32> to vector<8xf32>
    %67 = vector.shape_cast %66 : vector<8xf32> to vector<8x1xf32>
    %68 = math.log %67 : vector<8x1xf32>
    %69 = arith.addf %68, %62 : vector<8x1xf32>
    %70 = tpu.iota {dimensions = array<i32: 1>} : vector<1x24xi32>
    %c0_44 = arith.constant 0 : index
    %71 = memref.load %arg2[%c0_44] : memref<8xi32, #tpu.memory_space<smem>>
    %72 = vector.broadcast %71 : i32 to vector<1x24xi32>
    %73 = arith.cmpi eq, %70, %72 : vector<1x24xi32>
    %74 = arith.extui %73 : vector<1x24xi1> to vector<1x24xi32>
    %75 = arith.sitofp %74 : vector<1x24xi32> to vector<1x24xf32>
    %c1_45 = arith.constant 1 : index
    %76 = memref.load %arg2[%c1_45] : memref<8xi32, #tpu.memory_space<smem>>
    %77 = vector.broadcast %76 : i32 to vector<1x24xi32>
    %78 = arith.cmpi eq, %70, %77 : vector<1x24xi32>
    %79 = arith.extui %78 : vector<1x24xi1> to vector<1x24xi32>
    %80 = arith.sitofp %79 : vector<1x24xi32> to vector<1x24xf32>
    %c2_46 = arith.constant 2 : index
    %81 = memref.load %arg2[%c2_46] : memref<8xi32, #tpu.memory_space<smem>>
    %82 = vector.broadcast %81 : i32 to vector<1x24xi32>
    %83 = arith.cmpi eq, %70, %82 : vector<1x24xi32>
    %84 = arith.extui %83 : vector<1x24xi1> to vector<1x24xi32>
    %85 = arith.sitofp %84 : vector<1x24xi32> to vector<1x24xf32>
    %c3_47 = arith.constant 3 : index
    %86 = memref.load %arg2[%c3_47] : memref<8xi32, #tpu.memory_space<smem>>
    %87 = vector.broadcast %86 : i32 to vector<1x24xi32>
    %88 = arith.cmpi eq, %70, %87 : vector<1x24xi32>
    %89 = arith.extui %88 : vector<1x24xi1> to vector<1x24xi32>
    %90 = arith.sitofp %89 : vector<1x24xi32> to vector<1x24xf32>
    %c4 = arith.constant 4 : index
    %91 = memref.load %arg2[%c4] : memref<8xi32, #tpu.memory_space<smem>>
    %92 = vector.broadcast %91 : i32 to vector<1x24xi32>
    %93 = arith.cmpi eq, %70, %92 : vector<1x24xi32>
    %94 = arith.extui %93 : vector<1x24xi1> to vector<1x24xi32>
    %95 = arith.sitofp %94 : vector<1x24xi32> to vector<1x24xf32>
    %c5 = arith.constant 5 : index
    %96 = memref.load %arg2[%c5] : memref<8xi32, #tpu.memory_space<smem>>
    %97 = vector.broadcast %96 : i32 to vector<1x24xi32>
    %98 = arith.cmpi eq, %70, %97 : vector<1x24xi32>
    %99 = arith.extui %98 : vector<1x24xi1> to vector<1x24xi32>
    %100 = arith.sitofp %99 : vector<1x24xi32> to vector<1x24xf32>
    %c6 = arith.constant 6 : index
    %101 = memref.load %arg2[%c6] : memref<8xi32, #tpu.memory_space<smem>>
    %102 = vector.broadcast %101 : i32 to vector<1x24xi32>
    %103 = arith.cmpi eq, %70, %102 : vector<1x24xi32>
    %104 = arith.extui %103 : vector<1x24xi1> to vector<1x24xi32>
    %105 = arith.sitofp %104 : vector<1x24xi32> to vector<1x24xf32>
    %c7 = arith.constant 7 : index
    %106 = memref.load %arg2[%c7] : memref<8xi32, #tpu.memory_space<smem>>
    %107 = vector.broadcast %106 : i32 to vector<1x24xi32>
    %108 = arith.cmpi eq, %70, %107 : vector<1x24xi32>
    %109 = arith.extui %108 : vector<1x24xi1> to vector<1x24xi32>
    %110 = arith.sitofp %109 : vector<1x24xi32> to vector<1x24xf32>
    %111 = tpu.concatenate %75, %80, %85, %90, %95, %100, %105, %110 in 0 : vector<1x24xf32>, vector<1x24xf32>, vector<1x24xf32>, vector<1x24xf32>, vector<1x24xf32>, vector<1x24xf32>, vector<1x24xf32>, vector<1x24xf32> -> vector<8x24xf32>
    %112 = arith.mulf %60, %111 : vector<8x24xf32>
    %cst_48 = arith.constant dense<0.000000e+00> : vector<8xf32>
    %113 = vector.multi_reduction <add>, %112, %cst_48 [1] : vector<8x24xf32> to vector<8xf32>
    %114 = vector.shape_cast %113 : vector<8xf32> to vector<8x1xf32>
    %115 = arith.subf %69, %114 : vector<8x1xf32>
    %cst_49 = arith.constant dense<0.000000e+00> : vector<1xf32>
    %116 = vector.multi_reduction <add>, %115, %cst_49 [0] : vector<8x1xf32> to vector<1xf32>
    %117 = vector.shape_cast %116 : vector<1xf32> to vector<1x1xf32>
    %cst_50 = arith.constant 1.250000e-01 : f32
    %118 = vector.broadcast %cst_50 : f32 to vector<1x1xf32>
    %119 = arith.mulf %117, %118 : vector<1x1xf32>
    %c0_51 = arith.constant 0 : index
    %c0_52 = arith.constant 0 : index
    %120 = vector.load %arg7[%c0_51, %c0_52] : memref<1x1xf32, #tpu.memory_space<vmem>>, vector<1x1xf32>
    tpu.vector_store %arg7[%c0_51, %c0_52], %119 {strides = array<i32>} : memref<1x1xf32, #tpu.memory_space<vmem>>, vector<1x1xf32>,
    return
  }
  func.func @transform_0(%arg0: i32, %arg1: memref<2x4xi32, #tpu.memory_space<smem>>, %arg2: memref<8xi32, #tpu.memory_space<smem>>) -> (i32, i32, i32) {
    %c0_i32 = arith.constant 0 : i32
    %c0_i32_0 = arith.constant 0 : i32
    %c0_i32_1 = arith.constant 0 : i32
    %c0_i32_2 = arith.constant 0 : i32
    return %c0_i32, %c0_i32_0, %c0_i32_1 : i32, i32, i32
  }
  func.func @transform_1(%arg0: i32, %arg1: memref<2x4xi32, #tpu.memory_space<smem>>, %arg2: memref<8xi32, #tpu.memory_space<smem>>) -> (i32, i32) {
    %c0_i32 = arith.constant 0 : i32
    %c0_i32_0 = arith.constant 0 : i32
    %c0_i32_1 = arith.constant 0 : i32
    return %c0_i32, %c0_i32_0 : i32, i32
  }
  func.func @transform_2(%arg0: i32, %arg1: memref<2x4xi32, #tpu.memory_space<smem>>, %arg2: memref<8xi32, #tpu.memory_space<smem>>) -> (i32, i32) {
    %c0_i32 = arith.constant 0 : i32
    %c0_i32_0 = arith.constant 0 : i32
    %c0_i32_1 = arith.constant 0 : i32
    return %c0_i32, %c0_i32_0 : i32, i32
  }
  func.func @transform_3(%arg0: i32, %arg1: memref<2x4xi32, #tpu.memory_space<smem>>, %arg2: memref<8xi32, #tpu.memory_space<smem>>) -> (i32, i32) {
    %c0_i32 = arith.constant 0 : i32
    %c0_i32_0 = arith.constant 0 : i32
    %c0_i32_1 = arith.constant 0 : i32
    return %c0_i32, %c0_i32_0 : i32, i32
  }
  func.func @transform_4(%arg0: i32, %arg1: memref<2x4xi32, #tpu.memory_space<smem>>, %arg2: memref<8xi32, #tpu.memory_space<smem>>) -> (i32, i32) {
    %c0_i32 = arith.constant 0 : i32
    %c0_i32_0 = arith.constant 0 : i32
    %c0_i32_1 = arith.constant 0 : i32
    return %c0_i32, %c0_i32_0 : i32, i32
  }
}

</mosaic_0001>

<bundles_post_ra>
// kernel: transformer_forward.3
= control target key start
LH: loop header
LB: loop body
LE: loop exit
PB: predicated region body
PF: predicated region fallthrough
CT: control target
= control target key end

     0   :  { %s606_s0 = inlined_call_operand.vmem [shape: s32[2,4], index: 0, kind: input, shape index: {}]   ;;  %s607_s2 = inlined_call_operand.vmem [shape: f32[2,8,48], index: 2, kind: input, shape index: {}]   ;;  %s608_s3 = inlined_call_operand.vmem [shape: bf16[48,36], index: 3, kind: input, shape index: {}]   ;;  %s609_s4 = inlined_call_operand.vmem [shape: f32[1,36], index: 4, kind: input, shape index: {}]   ;;  %s610_s5 = inlined_call_operand.vmem [shape: bf16[24,36], index: 5, kind: input, shape index: {}]   ;;  %s611_s6 = inlined_call_operand.hbm [shape: f32[1,1], index: 6, kind: output, shape index: {}]   ;;  %s612_s1 = inlined_call_operand.vmem [shape: s32[8], index: 1, kind: input, shape index: {}]  }
   0x1   :  { %s11_s23 = sshll.u32 %s606_s0, 4  ;;  %s15_s26 = sshll.u32 %s612_s1, 4  ;;  %s12_s23 = int_to_ptr.vmem [resolvable:$true] %s11_s23  ;;  %s16_s26 = int_to_ptr.vmem [resolvable:$true] %s15_s26 }
   0x2   :  { %s435_s27 = scalar_lea.vmem %s12_s23, 32  ;;  %p440_p1 = scmp.lt.s32.totalorder %s12_s23, %s12_s23 }
   0x3   :  { %p436_p0 = scmp.ne.s32.totalorder %s12_s23, %s435_s27  ;;  %p441_p2 = scmp.lt.s32.totalorder %s435_s27, %s435_s27 }
   0x5   :  { %p442_p3 = por %p441_p2, %p440_p1 }
   0x7   :  { %p443_p4 = pnand %p442_p3, %p436_p0 }
   0x9   :  { %446 = shalt.err (!%p443_p4)  }
   0xa   :  { %s485_s28 = smov [#allocation4]   ;;  %s447_s29 = scalar_lea.vmem %s16_s26, 16 }
   0xb   :  { %14 = dma.vmem_to_smem %s12_s23, 32, %s485_s28, [#allocation3] }
   0xc   :  { %p448_p5 = scmp.ne.s32.totalorder %s16_s26, %s447_s29  ;;  %p452_p6 = scmp.lt.s32.totalorder %s16_s26, %s16_s26 }
   0xd   :  { %p453_p7 = scmp.lt.s32.totalorder %s447_s29, %s447_s29 }
   0xf   :  { %p454_p8 = por %p453_p7, %p452_p6 }
  0x11   :  { %p455_p9 = pnand %p454_p8, %p448_p5 }
  0x13   :  { %458 = shalt.err (!%p455_p9)  }
  0x14   :  { %s486_s0 = smov [#allocation5]  }
  0x15   :  { %18 = dma.vmem_to_smem %s16_s26, 16, %s486_s0, [#allocation3] }
  0x16   :  { %481 = dma.done.wait [#allocation3], 48 }
  0x17   :  { %482 = vsyncadd [#allocation3], 4294967248 }
  0x18   :  { %20 = sfence }
  0x19   :  { %v422_v0 = vld [vmem:[%s608_s3] sm:$0xff]   ;;  %v487_v1 = vmov 0.0   ;;  %v423_v2 = vld [vmem:[%s608_s3 + $0x8] sm:$0xff]   ;;  %vm488_vm0 = vmmov 0  }
  0x1a   :  { %399 = vmatprep.subr.bf16.mxu0 %v487_v1  ;;  %409 = vmatprep.subr.bf16.mxu1 %v487_v1 }
  0x1b   :  { %400 = vmatpush3.bf16.msra.mxu0 %v422_v0  ;;  %405 = vmatprep.mubr.msk.bf16.mxu0 %vm488_vm0, %v487_v1 }
  0x1c   :  { %401 = vmatprep.subr.bf16.mxu0 %v487_v1  ;;  %413 = vmatprep.mubr.msk.bf16.mxu1 %vm488_vm0, %v487_v1 }
  0x1d   :  { %21 = vsyncpa [#allocation7], 0  ;;  %v424_v3 = vld [vmem:[%s608_s3 + $0x10] sm:$0xff]   ;;  %v31_v4 = vld [vmem:[%s607_s2] sm:$0xff]  ;;  %vm65_vm1 = vcmask 392192   ;;  %vm116_vm2 = vcmask 293888   ;;  %v269_v55 = vlaneseq }
  0x1e   :  { %v32_v5 = vld [vmem:[%s607_s2 + $0x8] sm:$0xff]  ;;  %v425_v7 = vld [vmem:[%s610_s5] sm:$0xff]   ;;  %s363_s19 = sld [smem:[#allocation4 + $0x1]]  ;;  %s364_s20 = sld [smem:[#allocation4 + $0x2]]  ;;  %vm168_vm5 = vcmask 1040384   ;;  %vm170_vm6 = vcmask 1041408  }
  0x1f   :  { %402 = vmatpush3.bf16.msra.mxu0 %v423_v2  ;;  %v33_v6 = vpack.c.bf16 %v32_v5, %v31_v4  ;;  %v198_v8 = vsel %vm116_vm2, %v425_v7, 0  ;;  %v426_v9 = vld [vmem:[%s610_s5 + $0x8] ss:$0 sps:$4 sm:$0xff]   ;;  %v358_v11 = vld [vmem:[%s609_s4] ss:$0 sm:$0xff]  ;;  %s365_s5 = sld [smem:[#allocation4 + $0x3]] }
  0x20   :  { %403 = vmatprep.subr.bf16.mxu0 %v487_v1  ;;  %410 = vmatpush3.bf16.xpose.msra.mxu1 %v198_v8  ;;  %v201_v10 = vsel %vm116_vm2, %v426_v9, 0  ;;  %s366_s21 = sld [smem:[#allocation4 + $0x80]]  ;;  %s368_s4 = sld [smem:[#allocation4 + $0x81]]  ;;  %vm172_vm7 = vcmask 1042432   ;;  %vm174_vm8 = vcmask 1043456   ;;  %vm176_vm9 = vcmask 1044480  }
  0x21   :  { %411 = vmatprep.subr.bf16.mxu1 %v487_v1  ;;  %s119_s22 = sld [smem:[#allocation4]]  ;;  %s370_s23 = sld [smem:[#allocation4 + $0x82]]  ;;  %vm178_vm10 = vcmask 1045504   ;;  %vm180_vm11 = vcmask 1046528   ;;  %vm243_vm12 = vcmask 195584   ;;  %v270_v56 = vand.u32 127, %v269_v55 }
  0x22   :  { %s372_s24 = sld [smem:[#allocation4 + $0x83]]  ;;  %s271_s7 = sld [smem:[#allocation5]] }
  0x23   :  { %404 = vmatpush3.bf16.msra.mxu0 %v424_v3  ;;  %s378_s8 = sld [smem:[#allocation5 + $0x1]]  ;;  %s380_s9 = sld [smem:[#allocation5 + $0x2]] }
  0x24   :  { %s123_s25 = scalar_lea.vmem [#allocation2], %s363_s19  ;;  %s126_s26 = scalar_lea.vmem [#allocation2], %s364_s20 }
  0x25   :  { %s129_s27 = scalar_lea.vmem [#allocation2], %s365_s5  ;;  %s382_s10 = sld [smem:[#allocation5 + $0x3]] }
  0x26   :  { %406 = vmatmul.mubr.msk.bf16.vlgmr.msra.gmra.mrb[0].mxu0 %vm65_vm1, %v33_v6  ;;  %s350_s28 = scalar_lea.vmem [#allocation2], %s366_s21  ;;  %s352_s0 = scalar_lea.vmem [#allocation2], %s368_s4 }
  0x27   :  { %s120_s29 = scalar_lea.vmem [#allocation2], %s119_s22  ;;  %s354_s1 = scalar_lea.vmem [#allocation2], %s370_s23 }
  0x28   :  { %412 = vmatpush3.bf16.xpose.msra.mxu1 %v201_v10  ;;  %s356_s30 = scalar_lea.vmem [#allocation2], %s372_s24  ;;  %v272_v57 = vstv %s271_s7  ;;  %s384_s11 = sld [smem:[#allocation5 + $0x4]] }
  0x29   :  { %v277_v58 = vstv %s378_s8  ;;  %vm273_vm13 = vcmp.eq.s32.totalorder %v270_v56, %v272_v57  ;;  %v282_v59 = vstv %s380_s9  ;;  %s386_s12 = sld [smem:[#allocation5 + $0x5]]  ;;  %s388_s13 = sld [smem:[#allocation5 + $0x6]] }
  0x2a   :  { %vm278_vm14 = vcmp.eq.s32.totalorder %v270_v56, %v277_v58  ;;  %v377_v60 = vsel %vm273_vm13, 1.0, %v487_v1  ;;  %vm283_vm15 = vcmp.eq.s32.totalorder %v270_v56, %v282_v59  ;;  %s390_s14 = sld [smem:[#allocation5 + $0x7]]  ;;  %s489_s15 = smov [#allocation6]  }
  0x2b   :  { %v379_v61 = vsel %vm278_vm14, 1.0, %v487_v1  ;;  %v287_v62 = vstv %s382_s10  ;;  %v381_v63 = vsel %vm283_vm15, 1.0, %v487_v1  ;;  %s338_s16 = sshll.u32 %s489_s15, 4  ;;  %s339_s16 = int_to_ptr.vmem [resolvable:$true] %s338_s16 }
  0x2c   :  { %vm288_vm0 = vcmp.eq.s32.totalorder %v270_v56, %v287_v62  ;;  %v311_v2 = vsel %vm168_vm5, %v377_v60, %v379_v61  ;;  %s459_s3 = scalar_lea.vmem %s339_s16, 16  ;;  %s463_s17 = scalar_lea.vmem %s339_s16, 32 }
  0x2d   :  { %v383_v4 = vsel %vm288_vm0, 1.0, %v487_v1  ;;  %v312_v6 = vsel %vm170_vm6, %v311_v2, %v381_v63  ;;  %p460_p10 = scmp.ne.s32.totalorder %s339_s16, %s459_s3  ;;  %p464_p11 = scmp.lt.s32.totalorder %s339_s16, %s339_s16 }
  0x2e   :  { %v292_v0 = vstv %s384_s11  ;;  %v313_v9 = vsel %vm172_vm7, %v312_v6, %v383_v4  ;;  %p465_p12 = scmp.lt.s32.totalorder %s463_s17, %s459_s3 }
  0x2f   :  { %vm293_vm1 = vcmp.eq.s32.totalorder %v270_v56, %v292_v0  ;;  %v297_v5 = vstv %s386_s12  ;;  %v302_v8 = vstv %s388_s13 }
  0x30   :  { %v385_v7 = vsel %vm293_vm1, 1.0, %v487_v1  ;;  %p466_p13 = por %p465_p12, %p464_p11 }
  0x32   :  { %p467_p0 = pnand %p466_p13, %p460_p10 }
  0xf9   :  { %v103_v12 = vpop.f32.mrb[0].mxu0 }
  0xfa   :  { %v104_v13 = vadd.f32 %v358_v11, %v103_v12  ;;  %v407_v14 = vpop.f32.mrb[1].mxu0  ;;  %v314_v12 = vsel %vm174_vm8, %v313_v9, %v385_v7 }
  0xfb   :  { %v106_v15 = vpop.f32.mrb[2].mxu0 }
  0xfc   :  { %vm110_vm3 = vcmp.ge.f32.partialorder %v104_v13, 0.0  ;;  %v112_v16 = vmul.f32 0.01, %v104_v13  ;;  %v107_v17 = vadd.f32 %v358_v11, %v106_v15  ;;  %v408_v18 = vpop.f32.mrb[3].mxu0  ;;  %v307_v11 = vstv %s390_s14 }
  0xfe   :  { %v114_v19 = vsel %vm110_vm3, %v104_v13, %v112_v16  ;;  %vm111_vm4 = vcmp.ge.f32.partialorder %v107_v17, 0.0  ;;  %v113_v20 = vmul.f32 0.01, %v107_v17  ;;  %vm303_vm3 = vcmp.eq.s32.totalorder %v270_v56, %v302_v8 }
  0xff   :  { %117 = vst.msk [vmem:[#allocation2] sm:$0xff] %vm116_vm2, %v114_v19  ;;  %v389_v13 = vsel %vm303_vm3, 1.0, %v487_v1 }
 0x100   :  { %v115_v21 = vsel %vm111_vm4, %v107_v17, %v113_v20  ;;  %vm308_vm4 = vcmp.eq.s32.totalorder %v270_v56, %v307_v11 }
 0x101   :  { %118 = vst.msk [vmem:[#allocation2 + $0x8] sm:$0xff] %vm116_vm2, %v115_v21  ;;  %v391_v17 = vsel %vm308_vm4, 1.0, %v487_v1 }
 0x108   :  { %v124_v22 = vld [vmem:[%s123_s25] sm:$0x1]  ;;  %v367_v25 = vld [vmem:[%s350_s28 + $0x8] sm:$0x1] }
 0x109   :  { %v127_v23 = vld [vmem:[%s126_s26] sm:$0x1]  ;;  %v148_v26 = vrot.slane %v124_v22, 7  ;;  %v369_v29 = vld [vmem:[%s352_s0 + $0x8] sm:$0x1]  ;;  %v157_v34 = vrot.slane %v367_v25, 4 }
 0x10a   :  { %v130_v24 = vld [vmem:[%s129_s27] sm:$0x1]  ;;  %v151_v27 = vrot.slane %v127_v23, 6  ;;  %v371_v30 = vld [vmem:[%s354_s1 + $0x8] sm:$0x1]  ;;  %v160_v36 = vrot.slane %v369_v29, 3 }
 0x10b   :  { %v121_v28 = vld [vmem:[%s120_s29] sm:$0x1]  ;;  %v154_v31 = vrot.slane %v130_v24, 5  ;;  %v373_v33 = vld [vmem:[%s356_s30 + $0x8] sm:$0x1]  ;;  %v163_v38 = vrot.slane %v371_v30, 2 }
 0x10c   :  { %v169_v32 = vsel %vm168_vm5, %v121_v28, %v148_v26  ;;  %v166_v40 = vrot.slane %v373_v33, 1  ;;  %vm330_vm5 = vcmask 0  }
 0x10d   :  { %v171_v35 = vsel %vm170_vm6, %v169_v32, %v151_v27 }
 0x10e   :  { %v173_v37 = vsel %vm172_vm7, %v171_v35, %v154_v31 }
 0x10f   :  { %v175_v39 = vsel %vm174_vm8, %v173_v37, %v157_v34 }
 0x110   :  { %v177_v41 = vsel %vm176_vm9, %v175_v39, %v160_v36 }
 0x111   :  { %v179_v42 = vsel %vm178_vm10, %v177_v41, %v163_v38 }
 0x112   :  { %v181_v43 = vsel %vm180_vm11, %v179_v42, %v166_v40 }
 0x113   :  { %v182_v44 = vpack.c.bf16 %v181_v43, %v181_v43 }
 0x115   :  { %414 = vmatmul.mubr.msk.bf16.vlgmr.msra.gmra.mrb[0].mxu1 %vm116_vm2, %v182_v44  ;;  %vm298_vm2 = vcmp.eq.s32.totalorder %v270_v56, %v297_v5 }
 0x116   :  { %v387_v10 = vsel %vm298_vm2, 1.0, %v487_v1 }
 0x117   :  { %v315_v14 = vsel %vm176_vm9, %v314_v12, %v387_v10 }
 0x118   :  { %v316_v18 = vsel %vm178_vm10, %v315_v14, %v389_v13 }
 0x119   :  { %v317_v20 = vsel %vm180_vm11, %v316_v18, %v391_v17 }
 0x1e8   :  { %v237_v45 = vpop.f32.mrb[0].mxu1 }
 0x1e9   :  { %v415_v46 = vpop.f32.mrb[1].mxu1  ;;  %v244_v47 = vsel %vm243_vm12, %v237_v45, -inf }
 0x1ea   :  { %245 = vmax.xlane.f32.xlu0 %v244_v47  ;;  %v240_v48 = vpop.f32.mrb[2].mxu1 }
 0x1eb   :  { %v416_v49 = vpop.f32.mrb[3].mxu1 }
 0x277   :  { %v246_v50 = vpop.xlane.xlu0 %245 }
 0x278   :  { %v247_v51 = vsub.f32 %v237_v45, %v246_v50 }
 0x27a   :  { %v248_v52 = vmul.f32 1.442695, %v247_v51 }
 0x27c   :  { %427 = vpow2.f32 %v248_v52 }
 0x286   :  { %v428_v53 = vpop.eup %427 }
 0x287   :  { %v250_v54 = vsel %vm243_vm12, %v428_v53, 0.0 }
 0x288   :  { %251 = vadd.xlane.f32.xlu0 %v250_v54 }
 0x315   :  { %v252_v3 = vpop.xlane.xlu0 %251 }
 0x316   :  { %429 = vlog2.f32 %v252_v3 }
 0x320   :  { %v430_v15 = vpop.eup %429 }
 0x321   :  { %v254_v16 = vmul.f32 0.6931472, %v430_v15 }
 0x323   :  { %v255_v19 = vadd.f32 %v254_v16, %v246_v50 }
 0x325   :  { %v256_v21 = vsub.f32 %v237_v45, %v255_v19 }
 0x327   :  { %v257_v22 = vsel %vm243_vm12, %v256_v21, -inf  ;;  %v318_v23 = vmul.f32 %v317_v20, %v256_v21 }
 0x328   :  { %258 = vmax.xlane.f32.xlu1 %v257_v22 }
 0x329   :  { %v319_v24 = vsel %vm243_vm12, %v318_v23, 0.0 }
 0x32a   :  { %320 = vadd.xlane.f32.xlu0 %v319_v24 }
 0x3b5   :  { %v259_v25 = vpop.xlane.xlu1 %258 }
 0x3b6   :  { %v260_v26 = vsub.f32 %v256_v21, %v259_v25 }
 0x3b7   :  { %v321_v33 = vpop.xlane.xlu0 %320 }
 0x3b8   :  { %v261_v27 = vmul.f32 1.442695, %v260_v26 }
 0x3ba   :  { %431 = vpow2.f32 %v261_v27 }
 0x3c4   :  { %v432_v28 = vpop.eup %431 }
 0x3c5   :  { %v263_v1 = vsel %vm243_vm12, %v432_v28, 0.0 }
 0x3c6   :  { %264 = vadd.xlane.f32.xlu1 %v263_v1 }
 0x453   :  { %v265_v29 = vpop.xlane.xlu1 %264 }
 0x454   :  { %433 = vlog2.f32 %v265_v29 }
 0x45e   :  { %v434_v30 = vpop.eup %433 }
 0x45f   :  { %v267_v31 = vmul.f32 0.6931472, %v434_v30 }
 0x461   :  { %v268_v32 = vadd.f32 %v267_v31, %v259_v25 }
 0x463   :  { %v322_v34 = vsub.f32 %v268_v32, %v321_v33 }
 0x465   :  { %v323_v35 = vrot.slane %v322_v34, 4 }
 0x467   :  { %v324_v36 = vadd.f32 %v323_v35, %v322_v34 }
 0x469   :  { %v325_v37 = vrot.slane %v324_v36, 2 }
 0x46b   :  { %v326_v38 = vadd.f32 %v325_v37, %v324_v36 }
 0x46d   :  { %v327_v39 = vrot.slane %v326_v38, 1 }
 0x46f   :  { %v328_v40 = vadd.f32 %v327_v39, %v326_v38 }
 0x471   :  { %v329_v41 = vmul.f32 0.125, %v328_v40 }
 0x473   :  { %331 = vst.msk [vmem:[#allocation6] sm:$0x1] %vm330_vm5, %v329_v41 }
 0x474   :  { %470 = shalt.err (!%p467_p0)
}
 0x475   :  { %s471_s19 = scalar_lea.hbm %s611_s6, 16 }
 0x476   :  { %p472_p1 = scmp.ne.s32.totalorder %s611_s6, %s471_s19  ;;  %p475_p2 = scmp.lt.u32.totalorder %s471_s19, %s611_s6 }
 0x478   :  { %p477_p3 = pnand %p475_p2, %p472_p1 }
 0x47a   :  { %480 = shalt.err (!%p477_p3)
}
 0x47b   :  { %341 = dma.vmem_to_hbm [thread:$0]  %s339_s16, 16, %s611_s6, [#allocation7]  }
 0x47c   :  { %483 = dma.done.wait [#allocation7], 16  }
 0x47d   :  { %484 = vsyncadd [#allocation7], 4294967280 }
 0x47e   :  { %345 = vsyncpa [#allocation7], 1 }

// kernel: transformer_forward.2
= control target key start
LH: loop header
LB: loop body
LE: loop exit
PB: predicated region body
PF: predicated region fallthrough
CT: control target
= control target key end

     0   :  { %s1865_s24 = smov 0   ;;  %s1867_s25 = smov 0   ;;  %s2145_s0 = inlined_call_operand.vmem [shape: f32[2,8,48], index: 0, kind: input, shape index: {}]   ;;  %s2146_s1 = inlined_call_operand.vmem [shape: bf16[2,48,240], index: 1, kind: input, shape index: {}]   ;;  %s2147_s2 = inlined_call_operand.vmem [shape: f32[2,1,240], index: 2, kind: input, shape index: {}]   ;;  %s2148_s3 = inlined_call_operand.vmem [shape: bf16[2,144,48], index: 3, kind: input, shape index: {}]   ;;  %s2149_s4 = inlined_call_operand.vmem [shape: f32[2,1,48], index: 4, kind: input, shape index: {}]   ;;  %s2150_s5 = inlined_call_operand.vmem [shape: f32[2,1,48], index: 5, kind: input, shape index: {}]   ;;  %s2151_s6 = inlined_call_operand.vmem [shape: f32[2,1,48], index: 6, kind: input, shape index: {}]   ;;  %s2152_s7 = inlined_call_operand.vmem [shape: f32[2,8,48], index: 7, kind: output, shape index: {}]  }
   0x1   :  { %2154 = sst [smem:[#allocation5_spill]] %s2145_s0  ;;  %s1869_s26 = smov 0  }
   0x2   :  { %s1871_s27 = smov 0   ;;  %s1873_s28 = smov 0  }
   0x3 LB: > { %2155 = sst [smem:[#allocation2_spill]] %s1804_s27  ;;  %s26_s29 = sadd.s32 1, %s1800_s26  ;;  %s1808_s28 = sphi %s1873_s28, %s17_s28   ;;  %s1804_s27 = sphi %s1871_s27, %s2161_s27   ;;  %s1800_s26 = sphi %s1869_s26, %s2163_s26   ;;  %s1796_s25 = sphi %s1867_s25, %s2159_s25   ;;  %s1792_s24 = sphi %s1865_s24, %s2162_s24  }
   0x4   : > { %s29_s30 = sadd.s32 1, %s1804_s27  ;;  %p27_p0 = scmp.ge.s32.totalorder %s26_s29, 2 }
   0x5   : > { %p1532_p1 = scmp.ge.s32.totalorder %s1808_s28, 1  ;;  %p301_p2 = scmp.lt.s32.totalorder %s1808_s28, 5 }
   0x6   : > { %s2165_s29 = smov (%p27_p0, %s26_s29), 0  ;;  %s2167_s30 = smov (!%p27_p0, %s29_s30), %s1804_s27 }
   0x7   : > { %2156 = sst [smem:[#allocation3_spill]] %s2165_s29  ;;  %p302_p3 = pnand %p1532_p1, %p301_p2 }
   0x8   : > { %p31_p4 = scmp.ge.s32.totalorder %s2167_s30, 2  ;;  %p354_p5 = scmp.lt.s32.totalorder (!%p302_p3), %s1796_s25, 1 }
   0x9   : > { %305 = sbr.rel (%p302_p3) target bundleno = 1975 (0x7b7), region = 48  ;;  %p358_p6 = scmp.lt.s32.totalorder (!%p302_p3), %s1792_s24, 1 }
   0xa   : > { %s2169_s30 = smov (%p31_p4, %s2167_s30), 0  ;;  %s2158_s0 = sld [smem:[#allocation5_spill]] (!%p302_p3) }
   0xb   : > { %2157 = sst [smem:[#allocation4_spill]] %s2169_s30  ;;  %p1538_p7 = scmp.ne.s32.totalorder (!%p302_p3), %s1792_s24, 0 }
  0x10   : > { %s2171_s25 = smov (!%p354_p5, %s1796_s25), 1  ;;  %vm391_vm0 = vcmask (!%p1538_p7), 392192  }
  0x11   : > { %s1899_s8 = scalar_select %p358_p6, %s1792_s24, 1 }
  0x12   : > { %s1533_s9 = sshll.u32 %s2171_s25, 3  ;;  %389 = sbr.rel (%p1538_p7) target bundleno = 26 (0x1a), region = 52 }
  0x13   : > { %s357_s12 = scalar_lea.vmem %s2158_s0, %s1533_s9  ;;  %s1669_s13 = smul.u32 48, %s1899_s8 }
  0x14   : > { %s1535_s14 = sshll.u32 %s1899_s8, 1  ;;  %s1670_s15 = smul.u32 72, %s1899_s8  ;;  %v390_v0 = vld [vmem:[%s357_s12] sm:$0xff] (!%p1538_p7) }
  0x15   : > { %s362_s18 = scalar_lea.vmem %s2146_s1, %s1669_s13  ;;  %s1913_s21 = scalar_lea.vmem %s2147_s2, %s1535_s14 }
  0x16   : > { %s1918_s25 = scalar_lea.vmem %s2148_s3, %s1670_s15  ;;  %s374_s11 = scalar_lea.vmem %s2149_s4, %s1899_s8 }
  0x17   : > { %s377_s27 = scalar_lea.vmem %s2150_s5, %s1899_s8  ;;  %s380_s17 = scalar_lea.vmem %s2151_s6, %s1899_s8 }
  0x18   : > { %s1935_s20 = scalar_lea.vmem %s2152_s7, %s1533_s9 }
  0x19   : > { %392 = vst.msk [vmem:[%s1935_s20] sm:$0xff] %vm391_vm0, %v390_v0 }
  0x1a PF: > { %v1726_v1 = vld [vmem:[%s362_s18 + $0x4] ss:$8 sps:$4 sm:$0xff]   ;;  %v1728_v2 = vld [vmem:[%s362_s18] ss:$8 sps:$4 sm:$0xff]   ;;  %v1810_v3 = vmov 0   ;;  %vm443_vm1 = vcmask 392192   ;;  %v403_v10 = vlaneseq }
  0x1b   : > { %479 = vmatprep.mubr.bf16.mxu1 %v1810_v3  ;;  %447 = vmatprep.subr.bf16.mxu1 %v1726_v1  ;;  %v1729_v4 = vld [vmem:[%s362_s18 + $0x14] ss:$8 sps:$4 sm:$0xff]   ;;  %v1731_v5 = vld [vmem:[%s362_s18 + $0x10] ss:$8 sps:$4 sm:$0xff]   ;;  %v1732_v6 = vld [vmem:[%s362_s18 + $0x24] ss:$8 sps:$4 sm:$0xff]  }
  0x1c   : > { %448 = vmatpush1.bf16.msra.mxu1 %v1728_v2  ;;  %v1734_v7 = vld [vmem:[%s362_s18 + $0x20] ss:$8 sps:$4 sm:$0xff]   ;;  %v1946_v11 = vshrl.u32 %v403_v10, 7  ;;  %v1811_v18 = vmov 0.0   ;;  %vm1812_vm3 = vmmov 0   ;;  %s1813_s0 = smov 104  }
  0x1d   : > { %449 = vmatprep.subr.bf16.mxu1 %v1729_v4  ;;  %v1950_v13 = vld [vmem:[%s1913_s21] sm:$0x3]  ;;  %1609 = vmatprep.subr.bf16.mxu0 %v1811_v18  ;;  %s1814_s24 = smov 120   ;;  %s1815_s29 = smov 96   ;;  %vm549_vm4 = vcmask 64512   ;;  %vm519_vm6 = vcmask 850944  }
  0x1e   : > { %v405_v12 = vsub.s32 0, %v1946_v11  ;;  %1611 = vmatprep.mubr.msk.bf16.mxu0 %vm1812_vm3, %v1811_v18  ;;  %s1816_s30 = smov 112   ;;  %s1817_s9 = smov 88   ;;  %vm923_vm7 = vcmask 1043456   ;;  %vm1232_vm8 = vcmask 195584   ;;  %vm1322_vm9 = vcmask 130048  }
  0x1f   : > { %s1818_s12 = smov 80   ;;  %s1819_s15 = smov 56   ;;  %vm1235_vm10 = vcmask 588800   ;;  %vm1237_vm11 = vcmask 785408   ;;  %vm1239_vm12 = vcmask 982016  }
  0x20   : > { %v1941_v8 = vld [vmem:[%s1935_s20] sm:$0xff]  ;;  %450 = vmatpush1.bf16.msra.mxu1 %v1731_v5  ;;  %v406_v14 = vrot.slane %v1950_v13, %v405_v12  ;;  %s1820_s18 = smov 8   ;;  %s1821_s21 = smov 32  }
  0x21   : > { %451 = vmatprep.subr.bf16.mxu1 %v1732_v6  ;;  %v394_v9 = vpack.c.bf16 %v1941_v8, %v1941_v8  ;;  %s1822_s22 = smov 24   ;;  %s1823_s23 = smov 48  }
  0x22   : > { %s1824_s10 = smov 72  }
  0x24   : > { %452 = vmatpush1.bf16.msra.mxu1 %v1734_v7 }
  0x25   : > { %1597 = vmatprep.subr.bf16.mxu1 %v1811_v18 }
  0x27   : > { %1545 = vmatmul.mubr.msk.bf16.vlgmr.msra.gmra.mrb[0].mxu1 %vm443_vm1, %v394_v9 }
  0x28   : > { %1599 = vmatprep.mubr.msk.bf16.mxu1 %vm1812_vm3, %v1811_v18 }
  0xfa   : > { %v481_v15 = vpop.f32.mrb[0].mxu1 }
  0xfb   : > { %v482_v16 = vadd.f32 %v481_v15, %v406_v14  ;;  %v1953_v17 = vpop.f32.mrb[1].mxu1 }
  0xfc   : > { %v485_v19 = vpop.f32.mrb[2].mxu1 }
  0xfd   : > { %vm488_vm2 = vcmp.ge.f32.partialorder %v482_v16, 0.0  ;;  %v490_v20 = vmul.f32 0.01, %v482_v16  ;;  %v486_v21 = vpop.f32.mrb[3].mxu1 }
  0xff   : > { %v492_v22 = vsel %vm488_vm2, %v482_v16, %v490_v20  ;;  %v409_v16 = vsub.s32 1, %v1946_v11 }
 0x100   : > { %501 = vrot.lane.b32.xlu1 %v492_v22, %s1813_s0  ;;  %495 = vrot.lane.b32.xlu0 %v492_v22, %s1814_s24  ;;  %v1964_v23 = vpack.c.bf16 %v492_v22, %v492_v22  ;;  %v510_v36 = vmul.f32 0.35355338, %v492_v22 }
 0x102   : > { %v534_v37 = vpack.c.bf16 %v510_v36, %v510_v36 }
 0x104   : > { %504 = vrot.lane.b32.xlu1 %v492_v22, %s1815_s29  ;;  %498 = vrot.lane.b32.xlu0 %v492_v22, %s1816_s30 }
 0x108   : > { %507 = vrot.lane.b32.xlu0 %v492_v22, %s1817_s9  ;;  %547 = vrot.lane.b32.xlu1 %v1964_v23, %s1818_s12 }
 0x172   : > { %v1968_v24 = vpop.permute.xlu1 %501  ;;  %v496_v25 = vpop.permute.xlu0 %495 }
 0x173   : > { %v541_v26 = vpack.c.bf16 %v496_v25, %v496_v25  ;;  %v543_v29 = vpack.c.bf16 %v1968_v24, %v1968_v24  ;;  %v511_v40 = vmul.f32 0.35355338, %v496_v25  ;;  %v513_v48 = vmul.f32 0.35355338, %v1968_v24 }
 0x175   : > { %597 = vrot.lane.b32.xlu0 %v541_v26, %s1818_s12  ;;  %v535_v44 = vpack.c.bf16 %v511_v40, %v511_v40  ;;  %v537_v52 = vpack.c.bf16 %v513_v48, %v513_v48  ;;  %v410_v26 = vrot.slane %v1950_v13, %v409_v16 }
 0x176   : > { %v505_v27 = vpop.permute.xlu1 %504  ;;  %v499_v28 = vpop.permute.xlu0 %498 }
 0x177   : > { %v542_v30 = vpack.c.bf16 %v499_v28, %v499_v28  ;;  %v544_v33 = vpack.c.bf16 %v505_v27, %v505_v27  ;;  %v512_v45 = vmul.f32 0.35355338, %v499_v28  ;;  %v514_v53 = vmul.f32 0.35355338, %v505_v27 }
 0x179   : > { %695 = vrot.lane.b32.xlu0 %v543_v29, %s1818_s12  ;;  %646 = vrot.lane.b32.xlu1 %v542_v30, %s1818_s12  ;;  %v536_v49 = vpack.c.bf16 %v512_v45, %v512_v45  ;;  %v538_v55 = vpack.c.bf16 %v514_v53, %v514_v53 }
 0x17a   : > { %v508_v31 = vpop.permute.xlu0 %507  ;;  %v548_v32 = vpop.permute.xlu1 %547 }
 0x17b   : > { %v545_v34 = vpack.c.bf16 %v508_v31, %v508_v31  ;;  %v554_v35 = vsel %vm549_vm4, %v548_v32, 0  ;;  %v515_v56 = vmul.f32 0.35355338, %v508_v31  ;;  %v484_v31 = vadd.f32 %v1953_v17, %v410_v26 }
 0x17c   : > { %1598 = vmatpush3.bf16.xpose.msra.mxu1 %v554_v35 }
 0x17d   : > { %793 = vrot.lane.b32.xlu0 %v545_v34, %s1818_s12  ;;  %744 = vrot.lane.b32.xlu1 %v544_v33, %s1818_s12  ;;  %v539_v57 = vpack.c.bf16 %v515_v56, %v515_v56  ;;  %v491_v33 = vmul.f32 0.01, %v484_v31  ;;  %vm489_vm5 = vcmp.ge.f32.partialorder %v484_v31, 0.0 }
 0x17e   : > { %1603 = vmatprep.subr.bf16.mxu1 %v1811_v18 }
 0x17f   : > { %v493_v34 = vsel %vm489_vm5, %v484_v31, %v491_v33 }
 0x183   : > { %1600 = vmatmul.mubr.msk.bf16.vlgmr.msra.gmra.mrb[4].mxu1 %vm549_vm4, %v534_v37 }
 0x184   : > { %1605 = vmatprep.mubr.msk.bf16.mxu1 %vm1812_vm3, %v1811_v18 }
 0x1e7   : > { %v598_v38 = vpop.permute.xlu0 %597 }
 0x1e8   : > { %v603_v39 = vsel %vm549_vm4, %v598_v38, 0 }
 0x1e9   : > { %1604 = vmatpush3.bf16.xpose.msra.mxu1 %v603_v39 }
 0x1ea   : > { %1615 = vmatprep.subr.bf16.mxu1 %v1811_v18 }
 0x1eb   : > { %v647_v41 = vpop.permute.xlu1 %646  ;;  %v696_v43 = vpop.permute.xlu0 %695 }
 0x1ec   : > { %v652_v42 = vsel %vm549_vm4, %v647_v41, 0  ;;  %v701_v46 = vsel %vm549_vm4, %v696_v43, 0 }
 0x1ed   : > { %1610 = vmatpush3.bf16.xpose.msra.mxu0 %v652_v42 }
 0x1ee   : > { %1621 = vmatprep.subr.bf16.mxu0 %v1811_v18 }
 0x1ef   : > { %v745_v47 = vpop.permute.xlu1 %744  ;;  %v794_v51 = vpop.permute.xlu0 %793 }
 0x1f0   : > { %1606 = vmatmul.mubr.msk.bf16.vlgmr.msra.gmra.mrb[8].mxu1 %vm549_vm4, %v535_v44  ;;  %v750_v50 = vsel %vm549_vm4, %v745_v47, 0  ;;  %v799_v54 = vsel %vm549_vm4, %v794_v51, 0 }
 0x1f1   : > { %1616 = vmatpush3.bf16.xpose.msra.mxu1 %v701_v46  ;;  %1617 = vmatprep.mubr.msk.bf16.mxu1 %vm1812_vm3, %v1811_v18 }
 0x1f2   : > { %1627 = vmatprep.subr.bf16.mxu1 %v1811_v18 }
 0x1f4   : > { %1612 = vmatmul.mubr.msk.bf16.vlgmr.msra.gmra.mrb[0].mxu0 %vm549_vm4, %v536_v49 }
 0x1f5   : > { %1622 = vmatpush3.bf16.xpose.msra.mxu0 %v750_v50  ;;  %1623 = vmatprep.mubr.msk.bf16.mxu0 %vm1812_vm3, %v1811_v18 }
 0x1f6   : > { %1633 = vmatprep.subr.bf16.mxu0 %v1811_v18 }
 0x1f8   : > { %1618 = vmatmul.mubr.msk.bf16.vlgmr.msra.gmra.mrb[12].mxu1 %vm549_vm4, %v537_v52 }
 0x1f9   : > { %1628 = vmatpush3.bf16.xpose.msra.mxu1 %v799_v54  ;;  %1629 = vmatprep.mubr.msk.bf16.mxu1 %vm1812_vm3, %v1811_v18 }
 0x1fa   : > { %1639 = vmatprep.subr.bf16.mxu1 %v1811_v18 }
 0x1fc   : > { %1624 = vmatmul.mubr.msk.bf16.vlgmr.msra.gmra.mrb[4].mxu0 %vm549_vm4, %v538_v55 }
 0x1fd   : > { %1635 = vmatprep.mubr.msk.bf16.mxu0 %vm1812_vm3, %v1811_v18 }
 0x200   : > { %1630 = vmatmul.mubr.msk.bf16.vlgmr.msra.gmra.mrb[16].mxu1 %vm549_vm4, %v539_v57 }
 0x201   : > { %1641 = vmatprep.mubr.msk.bf16.mxu1 %vm1812_vm3, %v1811_v18 }
 0x256   : > { %v2008_v58 = vpop.f32.mrb[4].mxu1 }
 0x257   : > { %v1601_v59 = vpop.f32.mrb[5].mxu1  ;;  %v841_v60 = vsel %vm549_vm4, %v2008_v58, -inf }
 0x258   : > { %842 = vmax.xlane.f32.xlu1 %v841_v60  ;;  %v593_v61 = vpop.f32.mrb[6].mxu1 }
 0x259   : > { %v1602_v62 = vpop.f32.mrb[7].mxu1 }
 0x2c3   : > { %v2012_v63 = vpop.f32.mrb[8].mxu1 }
 0x2c4   : > { %v1607_v0 = vpop.f32.mrb[9].mxu1  ;;  %v844_v1 = vsel %vm549_vm4, %v2012_v63, -inf }
 0x2c5   : > { %845 = vmax.xlane.f32.xlu0 %v844_v1  ;;  %v642_v2 = vpop.f32.mrb[10].mxu1 }
 0x2c6   : > { %v1608_v4 = vpop.f32.mrb[11].mxu1 }
 0x2c7   : > { %v2016_v5 = vpop.f32.mrb[0].mxu0 }
 0x2c8   : > { %v1613_v6 = vpop.f32.mrb[1].mxu0  ;;  %v847_v7 = vsel %vm549_vm4, %v2016_v5, -inf }
 0x2c9   : > { %v691_v9 = vpop.f32.mrb[2].mxu0  ;;  %848 = vmax.xlane.f32.xlu0 %v847_v7 }
 0x2ca   : > { %v1614_v10 = vpop.f32.mrb[3].mxu0 }
 0x2cb   : > { %v2020_v12 = vpop.f32.mrb[12].mxu1 }
 0x2cc   : > { %v1619_v14 = vpop.f32.mrb[13].mxu1  ;;  %v850_v15 = vsel %vm549_vm4, %v2020_v12, -inf }
 0x2cd   : > { %851 = vmax.xlane.f32.xlu1 %v850_v15  ;;  %v740_v19 = vpop.f32.mrb[14].mxu1 }
 0x2ce   : > { %v1620_v20 = vpop.f32.mrb[15].mxu1 }
 0x2cf   : > { %v2025_v21 = vpop.f32.mrb[4].mxu0 }
 0x2d0   : > { %v1625_v22 = vpop.f32.mrb[5].mxu0  ;;  %v853_v25 = vsel %vm549_vm4, %v2025_v21, -inf }
 0x2d1   : > { %v789_v27 = vpop.f32.mrb[6].mxu0  ;;  %854 = vmax.xlane.f32.xlu0 %v853_v25 }
 0x2d2   : > { %v1626_v28 = vpop.f32.mrb[7].mxu0 }
 0x2d3   : > { %v2030_v29 = vpop.f32.mrb[16].mxu1 }
 0x2d4   : > { %v1631_v30 = vpop.f32.mrb[17].mxu1  ;;  %v856_v13 = vsel %vm549_vm4, %v2030_v29, -inf }
 0x2d5   : > { %v838_v11 = vpop.f32.mrb[18].mxu1 }
 0x2d6   : > { %v1632_v32 = vpop.f32.mrb[19].mxu1 }
 0x2de   : > { %522 = vrot.lane.b32.xlu1 %v493_v34, %s1818_s12 }
 0x2e2   : > { %525 = vrot.lane.b32.xlu1 %v493_v34, %s1819_s15 }
 0x2e5   : > { %v843_v35 = vpop.xlane.xlu1 %842 }
 0x2e6   : > { %531 = vrot.lane.b32.xlu1 %v493_v34, %s1820_s18  ;;  %v859_v48 = vsub.f32 %v2008_v58, %v843_v35 }
 0x2e7   : > { %517 = vrot.lane.b32.xlu0 %v493_v34, %s1813_s0 }
 0x2e8   : > { %v865_v50 = vmul.f32 1.442695, %v859_v48  ;;  %v1735_v48 = vld [vmem:[%s1918_s25] sm:$0xff]  }
 0x2ea   : > { %918 = vrot.lane.b32.xlu1 %v1964_v23, %s1821_s21  ;;  %1744 = vpow2.f32 %v865_v50 }
 0x2eb   : > { %528 = vrot.lane.b32.xlu0 %v493_v34, %s1821_s21 }
 0x2f4   : > { %v1745_v55 = vpop.eup %1744 }
 0x2f5   : > { %v877_v57 = vsel %vm549_vm4, %v1745_v55, 0.0 }
 0x30e   : > { %857 = vmax.xlane.f32.xlu1 %v856_v13 }
 0x352   : > { %v846_v17 = vpop.xlane.xlu0 %845 }
 0x353   : > { %v860_v49 = vsub.f32 %v2012_v63, %v846_v17 }
 0x355   : > { %v867_v51 = vmul.f32 1.442695, %v860_v49  ;;  %v1736_v49 = vld [vmem:[%s1918_s25 + $0x8] sm:$0xff]  }
 0x356   : > { %v849_v36 = vpop.xlane.xlu0 %848 }
 0x357   : > { %v861_v52 = vsub.f32 %v2016_v5, %v849_v36  ;;  %1746 = vpow2.f32 %v867_v51 }
 0x35a   : > { %v852_v37 = vpop.xlane.xlu1 %851 }
 0x35b   : > { %v862_v53 = vsub.f32 %v2020_v12, %v852_v37 }
 0x35d   : > { %v871_v54 = vmul.f32 1.442695, %v862_v53 }
 0x35e   : > { %v855_v38 = vpop.xlane.xlu0 %854  ;;  %v523_v39 = vpop.permute.xlu1 %522 }
 0x35f   : > { %v863_v40 = vsub.f32 %v2025_v21, %v855_v38  ;;  %v914_v41 = vpack.c.bf16 %v523_v39, %v523_v39 }
 0x361   : > { %1017 = vrot.lane.b32.xlu1 %v914_v41, %s1821_s21  ;;  %v1747_v56 = vpop.eup %1746  ;;  %v873_v4 = vmul.f32 1.442695, %v863_v40 }
 0x362   : > { %v518_v42 = vpop.permute.xlu0 %517  ;;  %v526_v23 = vpop.permute.xlu1 %525  ;;  %v880_v58 = vsel %vm549_vm4, %v1747_v56, 0.0 }
 0x363   : > { %v520_v43 = vsel %vm519_vm6, %v1968_v24, %v518_v42  ;;  %v869_v24 = vmul.f32 1.442695, %v861_v52  ;;  %v915_v63 = vpack.c.bf16 %v526_v23, %v526_v23 }
 0x364   : > { %v913_v44 = vpack.c.bf16 %v520_v43, %v520_v43 }
 0x365   : > { %1748 = vpow2.f32 %v869_v24 }
 0x366   : > { %968 = vrot.lane.b32.xlu0 %v913_v44, %s1821_s21  ;;  %v532_v45 = vpop.permute.xlu1 %531  ;;  %1750 = vpow2.f32 %v871_v54  ;;  %v529_v10 = vpop.permute.xlu0 %528 }
 0x367   : > { %v916_v12 = vpack.c.bf16 %v529_v10, %v529_v10  ;;  %v917_v14 = vpack.c.bf16 %v532_v45, %v532_v45 }
 0x36a   : > { %v919_v46 = vpop.permute.xlu1 %918 }
 0x36b   : > { %v925_v47 = vsel %vm923_vm7, %v919_v46, 0 }
 0x36c   : > { %1634 = vmatpush3.bf16.msra.mxu0 %v925_v47 }
 0x36d   : > { %1645 = vmatprep.subr.bf16.mxu0 %v1811_v18 }
 0x36f   : > { %v1749_v59 = vpop.eup %1748 }
 0x370   : > { %v883_v60 = vsel %vm549_vm4, %v1749_v59, 0.0  ;;  %v1751_v61 = vpop.eup %1750 }
 0x371   : > { %v886_v62 = vsel %vm549_vm4, %v1751_v61, 0.0 }
 0x385   : > { %878 = vadd.xlane.f32.xlu0 %v877_v57  ;;  %881 = vadd.xlane.f32.xlu1 %v880_v58  ;;  %v1738_v58 = vld [vmem:[%s1918_s25 + $0x18] sm:$0xff]  }
 0x389   : > { %884 = vadd.xlane.f32.xlu0 %v883_v60 }
 0x38d   : > { %887 = vadd.xlane.f32.xlu0 %v886_v62 }
 0x396   : > { %1066 = vrot.lane.b32.xlu1 %v915_v63, %s1821_s21 }
 0x39b   : > { %v858_v0 = vpop.xlane.xlu1 %857 }
 0x39c   : > { %v864_v1 = vsub.f32 %v2030_v29, %v858_v0 }
 0x39e   : > { %v875_v2 = vmul.f32 1.442695, %v864_v1 }
 0x3a0   : > { %1752 = vpow2.f32 %v875_v2  ;;  %v1739_v2 = vld [vmem:[%s1918_s25 + $0x20] sm:$0xff]  }
 0x3a1   : > { %1754 = vpow2.f32 %v873_v4 }
 0x3aa   : > { %v1753_v5 = vpop.eup %1752 }
 0x3ab   : > { %v892_v6 = vsel %vm549_vm4, %v1753_v5, 0.0  ;;  %v2057_v7 = vpop.eup %1754 }
 0x3ac   : > { %893 = vadd.xlane.f32.xlu0 %v892_v6  ;;  %v889_v9 = vsel %vm549_vm4, %v2057_v7, 0.0  ;;  %v1741_v6 = vld [vmem:[%s1918_s25 + $0x30] sm:$0xff]  }
 0x3ba   : > { %890 = vadd.xlane.f32.xlu1 %v889_v9  ;;  %v1743_v9 = vld [vmem:[%s1918_s25 + $0x40] sm:$0xff]  }
 0x3c2   : > { %1115 = vrot.lane.b32.xlu0 %v916_v12, %s1821_s21 }
 0x3cb   : > { %1164 = vrot.lane.b32.xlu1 %v917_v14, %s1821_s21 }
 0x3d3   : > { %v1018_v19 = vpop.permute.xlu1 %1017 }
 0x3d4   : > { %v1023_v33 = vsel %vm923_vm7, %v1018_v19, 0 }
 0x3d8   : > { %v969_v15 = vpop.permute.xlu0 %968 }
 0x3d9   : > { %v974_v16 = vsel %vm923_vm7, %v969_v15, 0 }
 0x3da   : > { %1640 = vmatpush3.bf16.msra.mxu1 %v974_v16 }
 0x3db   : > { %1651 = vmatprep.subr.bf16.mxu1 %v1811_v18 }
 0x412   : > { %v879_v20 = vpop.xlane.xlu0 %878  ;;  %v882_v21 = vpop.xlane.xlu1 %881 }
 0x413   : > { %1756 = vrcp.f32 %v879_v20 }
 0x414   : > { %1758 = vrcp.f32 %v882_v21 }
 0x416   : > { %v885_v22 = vpop.xlane.xlu0 %884  ;;  %v1067_v30 = vpop.permute.xlu1 %1066 }
 0x417   : > { %1760 = vrcp.f32 %v885_v22  ;;  %v1072_v34 = vsel %vm923_vm7, %v1067_v30, 0 }
 0x41a   : > { %v888_v25 = vpop.xlane.xlu0 %887 }
 0x41b   : > { %1762 = vrcp.f32 %v888_v25 }
 0x41d   : > { %v1757_v26 = vpop.eup %1756 }
 0x41e   : > { %v1759_v27 = vpop.eup %1758  ;;  %v896_v28 = vmul.f32 %v1757_v26, %v1745_v55 }
 0x41f   : > { %v898_v29 = vmul.f32 %v1759_v27, %v1747_v56  ;;  %v1737_v56 = vld [vmem:[%s1918_s25 + $0x10] sm:$0xff]  }
 0x420   : > { %v907_v31 = vpack.c.bf16 %v896_v28, %v896_v28 }
 0x421   : > { %v1761_v11 = vpop.eup %1760  ;;  %v908_v32 = vpack.c.bf16 %v898_v29, %v898_v29 }
 0x422   : > { %1636 = vmatmul.mubr.msk.bf16.vlgmr.msra.gmra.mrb[8].mxu0 %vm549_vm4, %v907_v31  ;;  %v900_v13 = vmul.f32 %v1761_v11, %v1749_v59 }
 0x423   : > { %1642 = vmatmul.mubr.msk.bf16.vlgmr.msra.gmra.mrb[20].mxu1 %vm549_vm4, %v908_v32  ;;  %1646 = vmatpush3.bf16.msra.mxu0 %v1023_v33 }
 0x424   : > { %1652 = vmatpush3.bf16.msra.mxu1 %v1072_v34  ;;  %1647 = vmatprep.mubr.msk.bf16.mxu0 %vm1812_vm3, %v1811_v18  ;;  %v909_v36 = vpack.c.bf16 %v900_v13, %v900_v13  ;;  %v1558_v34 = vld [vmem:[%s374_s11] ss:$0 sm:$0xff] }
 0x425   : > { %v1763_v17 = vpop.eup %1762  ;;  %1653 = vmatprep.mubr.msk.bf16.mxu1 %vm1812_vm3, %v1811_v18  ;;  %1657 = vmatprep.subr.bf16.mxu0 %v1811_v18 }
 0x426   : > { %v902_v35 = vmul.f32 %v1763_v17, %v1751_v61  ;;  %1663 = vmatprep.subr.bf16.mxu1 %v1811_v18 }
 0x428   : > { %v910_v37 = vpack.c.bf16 %v902_v35, %v902_v35 }
 0x42a   : > { %1648 = vmatmul.mubr.msk.bf16.vlgmr.msra.gmra.mrb[12].mxu0 %vm549_vm4, %v909_v36 }
 0x42b   : > { %1654 = vmatmul.mubr.msk.bf16.vlgmr.msra.gmra.mrb[24].mxu1 %vm549_vm4, %v910_v37  ;;  %1659 = vmatprep.mubr.msk.bf16.mxu0 %vm1812_vm3, %v1811_v18 }
 0x42c   : > { %1665 = vmatprep.mubr.msk.bf16.mxu1 %vm1812_vm3, %v1811_v18 }
 0x439   : > { %v894_v38 = vpop.xlane.xlu0 %893 }
 0x43a   : > { %1764 = vrcp.f32 %v894_v38 }
 0x43d   : > { %v1116_v39 = vpop.permute.xlu0 %1115 }
 0x43e   : > { %v1121_v40 = vsel %vm923_vm7, %v1116_v39, 0 }
 0x43f   : > { %1658 = vmatpush3.bf16.msra.mxu0 %v1121_v40 }
 0x440   : > { %1326 = vmatprep.subr.bf16.mxu0 %v1810_v3 }
 0x444   : > { %v1765_v41 = vpop.eup %1764 }
 0x445   : > { %v906_v23 = vmul.f32 %v1765_v41, %v1753_v5  ;;  %v1740_v5 = vld [vmem:[%s1918_s25 + $0x28] sm:$0xff]  }
 0x447   : > { %v891_v42 = vpop.xlane.xlu1 %890  ;;  %v912_v45 = vpack.c.bf16 %v906_v23, %v906_v23 }
 0x448   : > { %1766 = vrcp.f32 %v891_v42 }
 0x44b   : > { %v1165_v43 = vpop.permute.xlu1 %1164 }
 0x44c   : > { %v1170_v44 = vsel %vm923_vm7, %v1165_v43, 0 }
 0x44d   : > { %1664 = vmatpush3.bf16.msra.mxu1 %v1170_v44 }
 0x450   : > { %1666 = vmatmul.mubr.msk.bf16.vlgmr.msra.gmra.mrb[28].mxu1 %vm549_vm4, %v912_v45 }
 0x452   : > { %v1767_v18 = vpop.eup %1766 }
 0x453   : > { %v904_v46 = vmul.f32 %v1767_v18, %v2057_v7  ;;  %v1742_v7 = vld [vmem:[%s1918_s25 + $0x38] sm:$0xff]  }
 0x455   : > { %v911_v47 = vpack.c.bf16 %v904_v46, %v904_v46 }
 0x457   : > { %1660 = vmatmul.mubr.msk.bf16.vlgmr.msra.gmra.mrb[16].mxu0 %vm549_vm4, %v911_v47 }
 0x458   : > { %1327 = vmatpush1.bf16.msra.mxu0 %v1735_v48 }
 0x459   : > { %1328 = vmatprep.subr.bf16.mxu0 %v1810_v3 }
 0x45c   : > { %1329 = vmatpush1.bf16.msra.mxu0 %v1736_v49 }
 0x45d   : > { %1330 = vmatprep.subr.bf16.mxu0 %v1810_v3 }
 0x460   : > { %1331 = vmatpush1.bf16.msra.mxu0 %v1737_v56 }
 0x461   : > { %1332 = vmatprep.subr.bf16.mxu0 %v1810_v3 }
 0x464   : > { %1333 = vmatpush1.bf16.msra.mxu0 %v1738_v58 }
 0x465   : > { %1334 = vmatprep.subr.bf16.mxu0 %v1810_v3 }
 0x468   : > { %1335 = vmatpush1.bf16.msra.mxu0 %v1739_v2 }
 0x469   : > { %1336 = vmatprep.subr.bf16.mxu0 %v1810_v3 }
 0x46c   : > { %1337 = vmatpush1.bf16.msra.mxu0 %v1740_v5 }
 0x46d   : > { %1338 = vmatprep.subr.bf16.mxu0 %v1810_v3 }
 0x470   : > { %1339 = vmatpush1.bf16.msra.mxu0 %v1741_v6 }
 0x471   : > { %1340 = vmatprep.subr.bf16.mxu0 %v1810_v3 }
 0x474   : > { %1341 = vmatpush1.bf16.msra.mxu0 %v1742_v7 }
 0x475   : > { %1342 = vmatprep.subr.bf16.mxu0 %v1810_v3 }
 0x478   : > { %1343 = vmatpush1.bf16.msra.mxu0 %v1743_v9 }
 0x4f5   : > { %v2089_v50 = vpop.f32.mrb[8].mxu0 }
 0x4f6   : > { %v1010_v51 = vpop.f32.mrb[20].mxu1  ;;  %v1637_v52 = vpop.f32.mrb[9].mxu0 }
 0x4f7   : > { %1213 = vrot.lane.b32.xlu0 %v1010_v51, %s1822_s22  ;;  %v1643_v24 = vpop.f32.mrb[21].mxu1  ;;  %v964_v53 = vpop.f32.mrb[10].mxu0 }
 0x4f8   : > { %v1013_v54 = vpop.f32.mrb[22].mxu1  ;;  %v1638_v55 = vpop.f32.mrb[11].mxu0 }
 0x4f9   : > { %v1644_v57 = vpop.f32.mrb[23].mxu1 }
 0x4fd   : > { %v1059_v59 = vpop.f32.mrb[12].mxu0 }
 0x4fe   : > { %v1108_v60 = vpop.f32.mrb[24].mxu1  ;;  %1217 = vrot.lane.b32.xlu1 %v1059_v59, %s1823_s23  ;;  %v1649_v61 = vpop.f32.mrb[13].mxu0 }
 0x4ff   : > { %1221 = vrot.lane.b32.xlu0 %v1108_v60, %s1824_s10  ;;  %v1655_v62 = vpop.f32.mrb[25].mxu1  ;;  %v1062_v63 = vpop.f32.mrb[14].mxu0 }
 0x500   : > { %v1111_v0 = vpop.f32.mrb[26].mxu1  ;;  %v1650_v1 = vpop.f32.mrb[15].mxu0 }
 0x501   : > { %v1656_v4 = vpop.f32.mrb[27].mxu1 }
 0x523   : > { %v1206_v10 = vpop.f32.mrb[28].mxu1 }
 0x524   : > { %1229 = vrot.lane.b32.xlu0 %v1206_v10, %s1814_s24  ;;  %v1667_v12 = vpop.f32.mrb[29].mxu1 }
 0x525   : > { %v1209_v14 = vpop.f32.mrb[30].mxu1 }
 0x526   : > { %v1668_v15 = vpop.f32.mrb[31].mxu1 }
 0x52a   : > { %v1157_v16 = vpop.f32.mrb[16].mxu0 }
 0x52b   : > { %1225 = vrot.lane.b32.xlu1 %v1157_v16, %s1815_s29  ;;  %v1661_v19 = vpop.f32.mrb[17].mxu0 }
 0x52c   : > { %v1160_v20 = vpop.f32.mrb[18].mxu0 }
 0x52d   : > { %v1662_v21 = vpop.f32.mrb[19].mxu0 }
 0x569   : > { %v1214_v22 = vpop.permute.xlu0 %1213 }
 0x56a   : > { %v1233_v28 = vsel %vm1232_vm8, %v2089_v50, %v1214_v22  ;;  %v1570_v50 = vld [vmem:[%s380_s17] ss:$0 sm:$0xff] }
 0x570   : > { %v1218_v3 = vpop.permute.xlu1 %1217 }
 0x571   : > { %v1222_v25 = vpop.permute.xlu0 %1221  ;;  %v1234_v29 = vsel %vm443_vm1, %v1233_v28, %v1218_v3 }
 0x572   : > { %v1236_v30 = vsel %vm1235_vm10, %v1234_v29, %v1222_v25 }
 0x596   : > { %v1230_v26 = vpop.permute.xlu0 %1229 }
 0x597   : > { %v1242_v27 = vpack.c.bf16 %v1230_v26, %v1230_v26 }
 0x599   : > { %1568 = vmatprep.mubr.msk.bf16.mxu0 %vm1322_vm9, %v1242_v27 }
 0x59d   : > { %v1226_v31 = vpop.permute.xlu1 %1225 }
 0x59e   : > { %v1238_v11 = vsel %vm1237_vm11, %v1236_v30, %v1226_v31 }
 0x59f   : > { %v1240_v32 = vsel %vm1239_vm12, %v1238_v11, %v1230_v26 }
 0x5a0   : > { %v1241_v33 = vpack.c.bf16 %v1240_v32, %v1240_v32 }
 0x5a2   : > { %1359 = vmatmul.mubr.bf16.vlgmr.msra.gmra.mrb[20].mxu0 %v1241_v33 }
 0x675   : > { %v1360_v13 = vpop.f32.mrb[20].mxu0 }
 0x676   : > { %v1361_v17 = vadd.f32 %v1558_v34, %v1360_v13  ;;  %v1362_v35 = vpop.f32.mrb[21].mxu0 }
 0x677   : > { %v1363_v36 = vpop.f32.mrb[22].mxu0 }
 0x678   : > { %vm1366_vm13 = vcmp.ge.f32.partialorder %v1361_v17, 0.0  ;;  %v1367_v37 = vmul.f32 0.01, %v1361_v17  ;;  %v1364_v38 = vpop.f32.mrb[23].mxu0 }
 0x67a   : > { %v1368_v39 = vsel %vm1366_vm13, %v1361_v17, %v1367_v37 }
 0x67b   : > { %v1369_v40 = vadd.f32 %v1368_v39, %v1941_v8  ;;  %v1569_v8 = vld [vmem:[%s377_s27] ss:$0 sm:$0xff] }
 0x67d   : > { %v1370_v41 = vsel %vm443_vm1, %v1369_v40, 0.0 }
 0x67e   : > { %1371 = vadd.xlane.f32.xlu1 %v1370_v41 }
 0x70b   : > { %v1372_v42 = vpop.xlane.xlu1 %1371 }
 0x70c   : > { %v1374_v23 = vmul.f32 0.020833334, %v1372_v42 }
 0x70e   : > { %v1375_v43 = vsub.f32 %v1369_v40, %v1374_v23 }
 0x710   : > { %v1376_v44 = vmul.f32 %v1375_v43, %v1375_v43 }
 0x712   : > { %v1377_v45 = vsel %vm443_vm1, %v1376_v44, 0.0 }
 0x713   : > { %1378 = vadd.xlane.f32.xlu0 %v1377_v45 }
 0x7a0   : > { %v1379_v18 = vpop.xlane.xlu0 %1378 }
 0x7a1   : > { %v1380_v46 = vmul.f32 0.020833334, %v1379_v18 }
 0x7a3   : > { %v1381_v47 = vadd.f32 1e-05, %v1380_v46 }
 0x7a5   : > { %1768 = vrsqrt.f32 %v1381_v47 }
 0x7af   : > { %v1769_v48 = vpop.eup %1768 }
 0x7b0   : > { %v1383_v49 = vmul.f32 %v1769_v48, %v1375_v43 }
 0x7b2   : > { %v1391_v51 = vmul.f32 %v1569_v8, %v1383_v49 }
 0x7b4   : > { %v1399_v52 = vadd.f32 %v1570_v50, %v1391_v51 }
 0x7b6   : > { %1400 = vst.msk [vmem:[%s1935_s20] sm:$0xff] %vm443_vm1, %v1399_v52 }
 0x7b7 PF: > { %s17_s28 = sadd.s32 1, %s1808_s28   ;;  %s2159_s25 = sld [smem:[#allocation2_spill]] }
 0x7b8   : > { %p14_p8 = scmp.ge.s32.totalorder %s17_s28, 6   ;;  %s2160_s0 = sld [smem:[#allocation3_spill]] }
 0x7b9   : > { %s2161_s27 = sld [smem:[#allocation4_spill]]  ;;  %s2162_s24 = smov %s1800_s26 }
 0x7ba   :  { %16 = sbr.rel (!%p14_p8) target bundleno = 3 (0x3), region = 100 }
 0x7be   : > { %s2163_s26 = smov %s2160_s0 }

</bundles_post_ra>
